<compile_context>
chip_gen: v5e
topology: v5e:2x2
jax: 0.10.0
libtpu: 0.0.40
codegen_flags: <defaults>
</compile_context>

<pallas_src>
import jax
import jax.numpy as jnp
from jax import lax
from jax.experimental import pallas as pl
from jax.experimental.pallas import tpu as pltpu

LN_EPS = 1e-5        # PyTorch nn.LayerNorm default eps
_NT = (((1,), (1,)), ((), ()))   # dot_general dims for q @ k^T (contract last dims)


def _layer_norm(x, g, b):
    mu = jnp.mean(x, axis=-1, keepdims=True)
    var = jnp.mean((x - mu) ** 2, axis=-1, keepdims=True)
    return (x - mu) * jax.lax.rsqrt(var + LN_EPS) * g + b


def encoder_kernel(h_ref, bias_ref,
                   wqkv_ref, bqkv_ref, wo_ref, w1_ref, b1_ref, w2_ref, vecs_ref,
                   wfc_ref, bfc_ref,
                   out_ref):
    """Whole encoder: L x (BiasedMHA + LN + FFN + LN + ReLU) then final fc.

    Everything lives in VMEM (small graph); single grid point; layers unrolled.
    All matmuls f32 with f32 accumulation (no activation/weight casts).
    """
    x = h_ref[...]                               # (N, D) f32
    num_layers = wqkv_ref.shape[0]
    n_heads = bias_ref.shape[0]
    N, D = x.shape
    hd = D // n_heads

    # Bias is reused by every layer: load the (H, N, N) slab once, hoisted.
    bias = bias_ref[...]
    # NOTE: convention is bias[h, query_row, key_col]; if the upstream DGL
    # BiasedMHA bias were (src, dst, H) instead, this addition would be transposed.

    for l in range(num_layers):                  # static unroll over layers
        vecs = vecs_ref[l]                       # (6, D) f32, loaded once per layer
        bo, ln1_g, ln1_b = vecs[0:1], vecs[1:2], vecs[2:3]
        b2, ln2_g, ln2_b = vecs[3:4], vecs[4:5], vecs[5:6]

        # ---- BiasedMHA: fused QKV projection (q-scaling already folded in) ----
        qkv = jnp.dot(x, wqkv_ref[l],
                      preferred_element_type=jnp.float32) + bqkv_ref[l]   # (N, 3D) f32

        # Per-head scores, stacked row-wise into one (H*N, N) slab so that the
        # softmax (max / exp / sum / reciprocal) runs ONCE for all heads.
        s_rows = []
        for h in range(n_heads):                 # static unroll (heads = 4)
            q_h = qkv[:, h * hd:(h + 1) * hd]
            k_h = qkv[:, D + h * hd:D + (h + 1) * hd]
            # scores = q_h @ k_h^T  (no explicit transpose materialized)
            s_h = lax.dot_general(q_h, k_h, _NT,
                                  preferred_element_type=jnp.float32)     # (N, N)
            s_rows.append(s_h + bias[h])          # leading-dim head slice: free
        s = jnp.concatenate(s_rows, axis=0)       # (H*N, N)

        # numerically stable softmax, f32; reciprocal goes to the EUP slot
        m = jnp.max(s, axis=-1, keepdims=True)
        p = jnp.exp(s - m)
        p = p * pl.reciprocal(jnp.sum(p, axis=-1, keepdims=True), approx=True)

        # Per-head context, lane-concatenated into one (N, D) tile so the output
        # projection is a single matmul with the full Wo.
        ctx_cols = []
        for h in range(n_heads):
            p_h = p[h * N:(h + 1) * N, :]                                  # (N, N)
            v_h = qkv[:, 2 * D + h * hd:2 * D + (h + 1) * hd]              # (N, hd)
            ctx_cols.append(jnp.dot(p_h, v_h,
                                    preferred_element_type=jnp.float32))   # (N, hd)
        ctx = jnp.concatenate(ctx_cols, axis=1)                            # (N, D)

        attn = jnp.dot(ctx, wo_ref[l],
                       preferred_element_type=jnp.float32) + bo            # (N, D)

        # ---- residual + attn LayerNorm (post-norm, norm_first=False) ----
        h1 = _layer_norm(x + attn, ln1_g, ln1_b)

        # ---- FFN: Linear -> ReLU -> Linear ----
        f = jnp.dot(h1, w1_ref[l],
                    preferred_element_type=jnp.float32) + b1_ref[l]
        f = jnp.maximum(f, 0.0)
        f = jnp.dot(f, w2_ref[l],
                    preferred_element_type=jnp.float32) + b2

        # ---- residual + ffn LayerNorm, then the encoder's trailing ReLU ----
        x = jnp.maximum(_layer_norm(h1 + f, ln2_g, ln2_b), 0.0)

    # ---- final nn.Linear(in_size, out_size), fused into the same kernel ----
    out_ref[...] = (jnp.dot(x, wfc_ref[...],
                            preferred_element_type=jnp.float32) + bfc_ref[...])


def _vmem_spec():
    return pl.BlockSpec(memory_space=pltpu.MemorySpace.VMEM)


def prepare_attn_bias(bias_nnh):
    """One-time preprocessing: (N, N, H) -> (H, N, N) f32.

    Done outside the per-step forward so large-N biases are not re-transposed
    (extra HBM read+write of the largest tensor) on every call.
    """
    return jnp.transpose(bias_nnh, (2, 0, 1)).astype(jnp.float32)


@jax.jit
def graphormer_encoder(features, bias_hnn, params):
    """Forward pass matching Graphormer_encoder (dropout == identity, bsz = 1).

    `bias_hnn` must already be in (H, N, N) layout (see prepare_attn_bias).
    """
    h = features.astype(jnp.float32)                       # (N, D)
    (wqkv, bqkv, wo, w1, b1, w2, vecs, wfc, bfc) = params
    n = h.shape[0]
    out_size = wfc.shape[-1]
    args = (h, bias_hnn, wqkv, bqkv, wo, w1, b1, w2, vecs, wfc, bfc)
    return pl.pallas_call(
        encoder_kernel,
        out_shape=jax.ShapeDtypeStruct((n, out_size), jnp.float32),
        in_specs=[_vmem_spec()] * len(args),
        out_specs=_vmem_spec(),
    )(*args)


def init_params(key, in_size, hid_size, out_size, heads, num_gt_layers):
    """Deterministic synthetic parameters (shapes match the PyTorch module).

    Linear weights are stored TRANSPOSED vs. PyTorch, i.e. (in, out): y = x @ W + b.
    QKV weights/biases are fused along the output dim, with the attention scaling
    head_dim**-0.5 folded into the Q columns.  Everything stays f32 (tiny model;
    see header comment re: bf16 weights for production sizes).
    """
    def nrm(k, shape, scale=0.1):
        return (scale * jax.random.normal(k, shape)).astype(jnp.float32)

    hd = in_size // heads
    scaling = 1.0 / float(hd) ** 0.5

    wqkv_l, bqkv_l, wo_l, w1_l, b1_l, w2_l, vecs_l = ([] for _ in range(7))
    for _ in range(num_gt_layers):
        keys = jax.random.split(key, 13)
        key = keys[0]
        kq, kbq, kk, kbk, kv, kbv, ko, kbo, kw1, kbw1, kw2, kbw2 = keys[1:13]

        wq = nrm(kq, (in_size, in_size));   bq = nrm(kbq, (in_size,))
        wk = nrm(kk, (in_size, in_size));   bk = nrm(kbk, (in_size,))
        wv = nrm(kv, (in_size, in_size));   bv = nrm(kbv, (in_size,))
        wo = nrm(ko, (in_size, in_size));   bo = nrm(kbo, (in_size,))
        w1 = nrm(kw1, (in_size, hid_size)); b1 = nrm(kbw1, (hid_size,))
        w2 = nrm(kw2, (hid_size, in_size)); b2 = nrm(kbw2, (in_size,))
        ln1_g = jnp.ones((in_size,), jnp.float32)
        ln1_b = jnp.zeros((in_size,), jnp.float32)
        ln2_g = jnp.ones((in_size,), jnp.float32)
        ln2_b = jnp.zeros((in_size,), jnp.float32)

        # Fold the q scaling into the Q projection (weight and bias) so the
        # kernel never multiplies by head_dim**-0.5.
        wqkv_l.append(jnp.concatenate([wq * scaling, wk, wv], axis=1))      # (D, 3D)
        bqkv_l.append(jnp.concatenate([bq * scaling, bk, bv])[None, :])     # (1, 3D)
        wo_l.append(wo)                                                     # (D, D)
        w1_l.append(w1)                                                     # (D, hid)
        b1_l.append(b1[None, :])                                            # (1, hid)
        w2_l.append(w2)                                                     # (hid, D)
        vecs_l.append(jnp.stack([bo, ln1_g, ln1_b, b2, ln2_g, ln2_b]))      # (6, D)

    kfc, kbfc = jax.random.split(key)
    w_fc = nrm(kfc, (in_size, out_size))
    b_fc = nrm(kbfc, (out_size,))[None, :]

    return (
        jnp.stack(wqkv_l),                        # (L, D, 3D) f32
        jnp.stack(bqkv_l),                        # (L, 1, 3D) f32
        jnp.stack(wo_l),                          # (L, D, D)  f32
        jnp.stack(w1_l),                          # (L, D, hid) f32
        jnp.stack(b1_l),                          # (L, 1, hid) f32
        jnp.stack(w2_l),                          # (L, hid, D) f32
        jnp.stack(vecs_l),                        # (L, 6, D)  f32
        w_fc,                                     # (D, out)   f32
        b_fc,                                     # (1, out)   f32
    )


if __name__ == "__main__":
    # Small shapes consistent with the module.
    N = 8            # number of nodes (sequence length)
    in_size = 32
    hid_size = 64
    out_size = 16
    heads = 4
    num_layers = 3   # encoder builds num_layers - 1 = 2 GraphormerLayers
    # dropout treated as identity (eval mode)
    assert in_size % heads == 0

    key = jax.random.PRNGKey(0)
    k_feat, k_bias, k_par = jax.random.split(key, 3)
    features = jax.random.normal(k_feat, (N, in_size), dtype=jnp.float32)
    attn_bias = 0.1 * jax.random.normal(k_bias, (N, N, heads), dtype=jnp.float32)

    params = init_params(k_par, in_size, hid_size, out_size, heads,
                         num_gt_layers=num_layers - 1)

    # One-time bias layout preparation (outside the per-step path).
    bias_hnn = prepare_attn_bias(attn_bias)

    out = graphormer_encoder(features, bias_hnn, params)
    out = jax.block_until_ready(out)
    assert out.shape == (N, out_size), out.shape
    assert bool(jnp.all(jnp.isfinite(out)))
    print("KERNEL_OK")
</pallas_src>

<mosaic_0001>
module attributes {stable_mosaic.version = 11 : i64} {
  func.func @encoder_kernel(%arg0: memref<8x32xf32, #tpu.memory_space<vmem>>, %arg1: memref<4x8x8xf32, #tpu.memory_space<vmem>>, %arg2: memref<2x32x96xf32, #tpu.memory_space<vmem>>, %arg3: memref<2x1x96xf32, #tpu.memory_space<vmem>>, %arg4: memref<2x32x32xf32, #tpu.memory_space<vmem>>, %arg5: memref<2x32x64xf32, #tpu.memory_space<vmem>>, %arg6: memref<2x1x64xf32, #tpu.memory_space<vmem>>, %arg7: memref<2x64x32xf32, #tpu.memory_space<vmem>>, %arg8: memref<2x6x32xf32, #tpu.memory_space<vmem>>, %arg9: memref<32x16xf32, #tpu.memory_space<vmem>>, %arg10: memref<1x16xf32, #tpu.memory_space<vmem>>, %arg11: memref<8x16xf32, #tpu.memory_space<vmem>>) attributes {dimension_semantics = [], scalar_prefetch = 0 : i64, scratch_operands = 0 : i64, tpu.core_type = #tpu.core_type<tc>} {
    %c0 = arith.constant 0 : index
    %c0_0 = arith.constant 0 : index
    %0 = vector.load %arg0[%c0, %c0_0] : memref<8x32xf32, #tpu.memory_space<vmem>>, vector<8x32xf32>
    %c0_1 = arith.constant 0 : index
    %c0_2 = arith.constant 0 : index
    %c0_3 = arith.constant 0 : index
    %1 = vector.load %arg1[%c0_1, %c0_2, %c0_3] : memref<4x8x8xf32, #tpu.memory_space<vmem>>, vector<4x8x8xf32>
    %c0_4 = arith.constant 0 : index
    %c0_5 = arith.constant 0 : index
    %c0_6 = arith.constant 0 : index
    %2 = vector.load %arg8[%c0_4, %c0_5, %c0_6] : memref<2x6x32xf32, #tpu.memory_space<vmem>>, vector<1x6x32xf32>
    %3 = vector.shape_cast %2 : vector<1x6x32xf32> to vector<6x32xf32>
    %4 = vector.extract_strided_slice %3 {offsets = [0, 0], sizes = [1, 32], strides = [1, 1]} : vector<6x32xf32> to vector<1x32xf32>
    %5 = vector.extract_strided_slice %3 {offsets = [1, 0], sizes = [1, 32], strides = [1, 1]} : vector<6x32xf32> to vector<1x32xf32>
    %6 = vector.extract_strided_slice %3 {offsets = [2, 0], sizes = [1, 32], strides = [1, 1]} : vector<6x32xf32> to vector<1x32xf32>
    %7 = vector.extract_strided_slice %3 {offsets = [3, 0], sizes = [1, 32], strides = [1, 1]} : vector<6x32xf32> to vector<1x32xf32>
    %8 = vector.extract_strided_slice %3 {offsets = [4, 0], sizes = [1, 32], strides = [1, 1]} : vector<6x32xf32> to vector<1x32xf32>
    %9 = vector.extract_strided_slice %3 {offsets = [5, 0], sizes = [1, 32], strides = [1, 1]} : vector<6x32xf32> to vector<1x32xf32>
    %c0_7 = arith.constant 0 : index
    %c0_8 = arith.constant 0 : index
    %c0_9 = arith.constant 0 : index
    %10 = vector.load %arg2[%c0_7, %c0_8, %c0_9] : memref<2x32x96xf32, #tpu.memory_space<vmem>>, vector<1x32x96xf32>
    %11 = vector.shape_cast %10 : vector<1x32x96xf32> to vector<32x96xf32>
    %cst = arith.constant dense<0.000000e+00> : vector<8x96xf32>
    %12 = tpu.matmul %0, %11, %cst {dimension_numbers = #tpu.dot_dimension_numbers<[1], [0], [0], [1], [0, 0, 1, 1], [], []>} : vector<8x32xf32>, vector<32x96xf32>, vector<8x96xf32> -> vector<8x96xf32>
    %c0_10 = arith.constant 0 : index
    %c0_11 = arith.constant 0 : index
    %c0_12 = arith.constant 0 : index
    %13 = vector.load %arg3[%c0_10, %c0_11, %c0_12] : memref<2x1x96xf32, #tpu.memory_space<vmem>>, vector<1x1x96xf32>
    %14 = vector.shape_cast %13 : vector<1x1x96xf32> to vector<1x96xf32>
    %15 = vector.broadcast %14 : vector<1x96xf32> to vector<8x96xf32>
    %16 = arith.addf %12, %15 : vector<8x96xf32>
    %17 = vector.extract_strided_slice %16 {offsets = [0, 0], sizes = [8, 8], strides = [1, 1]} : vector<8x96xf32> to vector<8x8xf32>
    %18 = vector.extract_strided_slice %16 {offsets = [0, 32], sizes = [8, 8], strides = [1, 1]} : vector<8x96xf32> to vector<8x8xf32>
    %cst_13 = arith.constant dense<0.000000e+00> : vector<8x8xf32>
    %19 = tpu.matmul %17, %18, %cst_13 {dimension_numbers = #tpu.dot_dimension_numbers<[1], [1], [0], [0], [0, 0, 1, 0], [], []>} : vector<8x8xf32>, vector<8x8xf32>, vector<8x8xf32> -> vector<8x8xf32>
    %20 = vector.extract_strided_slice %1 {offsets = [0, 0, 0], sizes = [1, 8, 8], strides = [1, 1, 1]} : vector<4x8x8xf32> to vector<1x8x8xf32>
    %21 = vector.shape_cast %20 : vector<1x8x8xf32> to vector<8x8xf32>
    %22 = arith.addf %19, %21 : vector<8x8xf32>
    %23 = vector.extract_strided_slice %16 {offsets = [0, 8], sizes = [8, 8], strides = [1, 1]} : vector<8x96xf32> to vector<8x8xf32>
    %24 = vector.extract_strided_slice %16 {offsets = [0, 40], sizes = [8, 8], strides = [1, 1]} : vector<8x96xf32> to vector<8x8xf32>
    %cst_14 = arith.constant dense<0.000000e+00> : vector<8x8xf32>
    %25 = tpu.matmul %23, %24, %cst_14 {dimension_numbers = #tpu.dot_dimension_numbers<[1], [1], [0], [0], [0, 0, 1, 0], [], []>} : vector<8x8xf32>, vector<8x8xf32>, vector<8x8xf32> -> vector<8x8xf32>
    %26 = vector.extract_strided_slice %1 {offsets = [1, 0, 0], sizes = [1, 8, 8], strides = [1, 1, 1]} : vector<4x8x8xf32> to vector<1x8x8xf32>
    %27 = vector.shape_cast %26 : vector<1x8x8xf32> to vector<8x8xf32>
    %28 = arith.addf %25, %27 : vector<8x8xf32>
    %29 = vector.extract_strided_slice %16 {offsets = [0, 16], sizes = [8, 8], strides = [1, 1]} : vector<8x96xf32> to vector<8x8xf32>
    %30 = vector.extract_strided_slice %16 {offsets = [0, 48], sizes = [8, 8], strides = [1, 1]} : vector<8x96xf32> to vector<8x8xf32>
    %cst_15 = arith.constant dense<0.000000e+00> : vector<8x8xf32>
    %31 = tpu.matmul %29, %30, %cst_15 {dimension_numbers = #tpu.dot_dimension_numbers<[1], [1], [0], [0], [0, 0, 1, 0], [], []>} : vector<8x8xf32>, vector<8x8xf32>, vector<8x8xf32> -> vector<8x8xf32>
    %32 = vector.extract_strided_slice %1 {offsets = [2, 0, 0], sizes = [1, 8, 8], strides = [1, 1, 1]} : vector<4x8x8xf32> to vector<1x8x8xf32>
    %33 = vector.shape_cast %32 : vector<1x8x8xf32> to vector<8x8xf32>
    %34 = arith.addf %31, %33 : vector<8x8xf32>
    %35 = vector.extract_strided_slice %16 {offsets = [0, 24], sizes = [8, 8], strides = [1, 1]} : vector<8x96xf32> to vector<8x8xf32>
    %36 = vector.extract_strided_slice %16 {offsets = [0, 56], sizes = [8, 8], strides = [1, 1]} : vector<8x96xf32> to vector<8x8xf32>
    %cst_16 = arith.constant dense<0.000000e+00> : vector<8x8xf32>
    %37 = tpu.matmul %35, %36, %cst_16 {dimension_numbers = #tpu.dot_dimension_numbers<[1], [1], [0], [0], [0, 0, 1, 0], [], []>} : vector<8x8xf32>, vector<8x8xf32>, vector<8x8xf32> -> vector<8x8xf32>
    %38 = vector.extract_strided_slice %1 {offsets = [3, 0, 0], sizes = [1, 8, 8], strides = [1, 1, 1]} : vector<4x8x8xf32> to vector<1x8x8xf32>
    %39 = vector.shape_cast %38 : vector<1x8x8xf32> to vector<8x8xf32>
    %40 = arith.addf %37, %39 : vector<8x8xf32>
    %41 = tpu.concatenate %22, %28, %34, %40 in 0 : vector<8x8xf32>, vector<8x8xf32>, vector<8x8xf32>, vector<8x8xf32> -> vector<32x8xf32>
    %cst_17 = arith.constant dense<0xFF800000> : vector<32xf32>
    %42 = vector.multi_reduction <maximumf>, %41, %cst_17 [1] : vector<32x8xf32> to vector<32xf32>
    %43 = vector.shape_cast %42 : vector<32xf32> to vector<32x1xf32>
    %44 = vector.broadcast %43 : vector<32x1xf32> to vector<32x8xf32>
    %45 = arith.subf %41, %44 : vector<32x8xf32>
    %46 = math.exp %45 : vector<32x8xf32>
    %cst_18 = arith.constant dense<0.000000e+00> : vector<32xf32>
    %47 = vector.multi_reduction <add>, %46, %cst_18 [1] : vector<32x8xf32> to vector<32xf32>
    %48 = vector.shape_cast %47 : vector<32xf32> to vector<32x1xf32>
    %49 = tpu.reciprocal %48 {approx = true} : vector<32x1xf32> -> vector<32x1xf32>
    %50 = vector.broadcast %49 : vector<32x1xf32> to vector<32x8xf32>
    %51 = arith.mulf %46, %50 : vector<32x8xf32>
    %52 = vector.extract_strided_slice %51 {offsets = [0, 0], sizes = [8, 8], strides = [1, 1]} : vector<32x8xf32> to vector<8x8xf32>
    %53 = vector.extract_strided_slice %16 {offsets = [0, 64], sizes = [8, 8], strides = [1, 1]} : vector<8x96xf32> to vector<8x8xf32>
    %cst_19 = arith.constant dense<0.000000e+00> : vector<8x8xf32>
    %54 = tpu.matmul %52, %53, %cst_19 {dimension_numbers = #tpu.dot_dimension_numbers<[1], [0], [0], [1], [0, 0, 1, 1], [], []>} : vector<8x8xf32>, vector<8x8xf32>, vector<8x8xf32> -> vector<8x8xf32>
    %55 = vector.extract_strided_slice %51 {offsets = [8, 0], sizes = [8, 8], strides = [1, 1]} : vector<32x8xf32> to vector<8x8xf32>
    %56 = vector.extract_strided_slice %16 {offsets = [0, 72], sizes = [8, 8], strides = [1, 1]} : vector<8x96xf32> to vector<8x8xf32>
    %cst_20 = arith.constant dense<0.000000e+00> : vector<8x8xf32>
    %57 = tpu.matmul %55, %56, %cst_20 {dimension_numbers = #tpu.dot_dimension_numbers<[1], [0], [0], [1], [0, 0, 1, 1], [], []>} : vector<8x8xf32>, vector<8x8xf32>, vector<8x8xf32> -> vector<8x8xf32>
    %58 = vector.extract_strided_slice %51 {offsets = [16, 0], sizes = [8, 8], strides = [1, 1]} : vector<32x8xf32> to vector<8x8xf32>
    %59 = vector.extract_strided_slice %16 {offsets = [0, 80], sizes = [8, 8], strides = [1, 1]} : vector<8x96xf32> to vector<8x8xf32>
    %cst_21 = arith.constant dense<0.000000e+00> : vector<8x8xf32>
    %60 = tpu.matmul %58, %59, %cst_21 {dimension_numbers = #tpu.dot_dimension_numbers<[1], [0], [0], [1], [0, 0, 1, 1], [], []>} : vector<8x8xf32>, vector<8x8xf32>, vector<8x8xf32> -> vector<8x8xf32>
    %61 = vector.extract_strided_slice %51 {offsets = [24, 0], sizes = [8, 8], strides = [1, 1]} : vector<32x8xf32> to vector<8x8xf32>
    %62 = vector.extract_strided_slice %16 {offsets = [0, 88], sizes = [8, 8], strides = [1, 1]} : vector<8x96xf32> to vector<8x8xf32>
    %cst_22 = arith.constant dense<0.000000e+00> : vector<8x8xf32>
    %63 = tpu.matmul %61, %62, %cst_22 {dimension_numbers = #tpu.dot_dimension_numbers<[1], [0], [0], [1], [0, 0, 1, 1], [], []>} : vector<8x8xf32>, vector<8x8xf32>, vector<8x8xf32> -> vector<8x8xf32>
    %64 = tpu.concatenate %54, %57, %60, %63 in 1 : vector<8x8xf32>, vector<8x8xf32>, vector<8x8xf32>, vector<8x8xf32> -> vector<8x32xf32>
    %c0_23 = arith.constant 0 : index
    %c0_24 = arith.constant 0 : index
    %c0_25 = arith.constant 0 : index
    %65 = vector.load %arg4[%c0_23, %c0_24, %c0_25] : memref<2x32x32xf32, #tpu.memory_space<vmem>>, vector<1x32x32xf32>
    %66 = vector.shape_cast %65 : vector<1x32x32xf32> to vector<32x32xf32>
    %cst_26 = arith.constant dense<0.000000e+00> : vector<8x32xf32>
    %67 = tpu.matmul %64, %66, %cst_26 {dimension_numbers = #tpu.dot_dimension_numbers<[1], [0], [0], [1], [0, 0, 1, 1], [], []>} : vector<8x32xf32>, vector<32x32xf32>, vector<8x32xf32> -> vector<8x32xf32>
    %68 = vector.broadcast %4 : vector<1x32xf32> to vector<8x32xf32>
    %69 = arith.addf %67, %68 : vector<8x32xf32>
    %70 = arith.addf %0, %69 : vector<8x32xf32>
    %cst_27 = arith.constant dense<0.000000e+00> : vector<8xf32>
    %71 = vector.multi_reduction <add>, %70, %cst_27 [1] : vector<8x32xf32> to vector<8xf32>
    %72 = vector.shape_cast %71 : vector<8xf32> to vector<8x1xf32>
    %cst_28 = arith.constant 3.200000e+01 : f32
    %73 = vector.broadcast %cst_28 : f32 to vector<8x1xf32>
    %74 = arith.divf %72, %73 : vector<8x1xf32>
    %75 = vector.broadcast %74 : vector<8x1xf32> to vector<8x32xf32>
    %76 = arith.subf %70, %75 : vector<8x32xf32>
    %77 = arith.mulf %76, %76 : vector<8x32xf32>
    %cst_29 = arith.constant dense<0.000000e+00> : vector<8xf32>
    %78 = vector.multi_reduction <add>, %77, %cst_29 [1] : vector<8x32xf32> to vector<8xf32>
    %79 = vector.shape_cast %78 : vector<8xf32> to vector<8x1xf32>
    %cst_30 = arith.constant 3.200000e+01 : f32
    %80 = vector.broadcast %cst_30 : f32 to vector<8x1xf32>
    %81 = arith.divf %79, %80 : vector<8x1xf32>
    %82 = vector.broadcast %74 : vector<8x1xf32> to vector<8x32xf32>
    %83 = arith.subf %70, %82 : vector<8x32xf32>
    %cst_31 = arith.constant 9.99999974E-6 : f32
    %84 = vector.broadcast %cst_31 : f32 to vector<8x1xf32>
    %85 = arith.addf %81, %84 : vector<8x1xf32>
    %86 = math.rsqrt %85 : vector<8x1xf32>
    %87 = vector.broadcast %86 : vector<8x1xf32> to vector<8x32xf32>
    %88 = arith.mulf %83, %87 : vector<8x32xf32>
    %89 = vector.broadcast %5 : vector<1x32xf32> to vector<8x32xf32>
    %90 = arith.mulf %88, %89 : vector<8x32xf32>
    %91 = vector.broadcast %6 : vector<1x32xf32> to vector<8x32xf32>
    %92 = arith.addf %90, %91 : vector<8x32xf32>
    %c0_32 = arith.constant 0 : index
    %c0_33 = arith.constant 0 : index
    %c0_34 = arith.constant 0 : index
    %93 = vector.load %arg5[%c0_32, %c0_33, %c0_34] : memref<2x32x64xf32, #tpu.memory_space<vmem>>, vector<1x32x64xf32>
    %94 = vector.shape_cast %93 : vector<1x32x64xf32> to vector<32x64xf32>
    %cst_35 = arith.constant dense<0.000000e+00> : vector<8x64xf32>
    %95 = tpu.matmul %92, %94, %cst_35 {dimension_numbers = #tpu.dot_dimension_numbers<[1], [0], [0], [1], [0, 0, 1, 1], [], []>} : vector<8x32xf32>, vector<32x64xf32>, vector<8x64xf32> -> vector<8x64xf32>
    %c0_36 = arith.constant 0 : index
    %c0_37 = arith.constant 0 : index
    %c0_38 = arith.constant 0 : index
    %96 = vector.load %arg6[%c0_36, %c0_37, %c0_38] : memref<2x1x64xf32, #tpu.memory_space<vmem>>, vector<1x1x64xf32>
    %97 = vector.shape_cast %96 : vector<1x1x64xf32> to vector<1x64xf32>
    %98 = vector.broadcast %97 : vector<1x64xf32> to vector<8x64xf32>
    %99 = arith.addf %95, %98 : vector<8x64xf32>
    %cst_39 = arith.constant 0.000000e+00 : f32
    %100 = vector.broadcast %cst_39 : f32 to vector<8x64xf32>
    %101 = arith.maximumf %99, %100 : vector<8x64xf32>
    %c0_40 = arith.constant 0 : index
    %c0_41 = arith.constant 0 : index
    %c0_42 = arith.constant 0 : index
    %102 = vector.load %arg7[%c0_40, %c0_41, %c0_42] : memref<2x64x32xf32, #tpu.memory_space<vmem>>, vector<1x64x32xf32>
    %103 = vector.shape_cast %102 : vector<1x64x32xf32> to vector<64x32xf32>
    %cst_43 = arith.constant dense<0.000000e+00> : vector<8x32xf32>
    %104 = tpu.matmul %101, %103, %cst_43 {dimension_numbers = #tpu.dot_dimension_numbers<[1], [0], [0], [1], [0, 0, 1, 1], [], []>} : vector<8x64xf32>, vector<64x32xf32>, vector<8x32xf32> -> vector<8x32xf32>
    %105 = vector.broadcast %7 : vector<1x32xf32> to vector<8x32xf32>
    %106 = arith.addf %104, %105 : vector<8x32xf32>
    %107 = arith.addf %92, %106 : vector<8x32xf32>
    %cst_44 = arith.constant dense<0.000000e+00> : vector<8xf32>
    %108 = vector.multi_reduction <add>, %107, %cst_44 [1] : vector<8x32xf32> to vector<8xf32>
    %109 = vector.shape_cast %108 : vector<8xf32> to vector<8x1xf32>
    %cst_45 = arith.constant 3.200000e+01 : f32
    %110 = vector.broadcast %cst_45 : f32 to vector<8x1xf32>
    %111 = arith.divf %109, %110 : vector<8x1xf32>
    %112 = vector.broadcast %111 : vector<8x1xf32> to vector<8x32xf32>
    %113 = arith.subf %107, %112 : vector<8x32xf32>
    %114 = arith.mulf %113, %113 : vector<8x32xf32>
    %cst_46 = arith.constant dense<0.000000e+00> : vector<8xf32>
    %115 = vector.multi_reduction <add>, %114, %cst_46 [1] : vector<8x32xf32> to vector<8xf32>
    %116 = vector.shape_cast %115 : vector<8xf32> to vector<8x1xf32>
    %cst_47 = arith.constant 3.200000e+01 : f32
    %117 = vector.broadcast %cst_47 : f32 to vector<8x1xf32>
    %118 = arith.divf %116, %117 : vector<8x1xf32>
    %119 = vector.broadcast %111 : vector<8x1xf32> to vector<8x32xf32>
    %120 = arith.subf %107, %119 : vector<8x32xf32>
    %cst_48 = arith.constant 9.99999974E-6 : f32
    %121 = vector.broadcast %cst_48 : f32 to vector<8x1xf32>
    %122 = arith.addf %118, %121 : vector<8x1xf32>
    %123 = math.rsqrt %122 : vector<8x1xf32>
    %124 = vector.broadcast %123 : vector<8x1xf32> to vector<8x32xf32>
    %125 = arith.mulf %120, %124 : vector<8x32xf32>
    %126 = vector.broadcast %8 : vector<1x32xf32> to vector<8x32xf32>
    %127 = arith.mulf %125, %126 : vector<8x32xf32>
    %128 = vector.broadcast %9 : vector<1x32xf32> to vector<8x32xf32>
    %129 = arith.addf %127, %128 : vector<8x32xf32>
    %cst_49 = arith.constant 0.000000e+00 : f32
    %130 = vector.broadcast %cst_49 : f32 to vector<8x32xf32>
    %131 = arith.maximumf %129, %130 : vector<8x32xf32>
    %c1 = arith.constant 1 : index
    %c0_50 = arith.constant 0 : index
    %c0_51 = arith.constant 0 : index
    %132 = vector.load %arg8[%c1, %c0_50, %c0_51] : memref<2x6x32xf32, #tpu.memory_space<vmem>>, vector<1x6x32xf32>
    %133 = vector.shape_cast %132 : vector<1x6x32xf32> to vector<6x32xf32>
    %134 = vector.extract_strided_slice %133 {offsets = [0, 0], sizes = [1, 32], strides = [1, 1]} : vector<6x32xf32> to vector<1x32xf32>
    %135 = vector.extract_strided_slice %133 {offsets = [1, 0], sizes = [1, 32], strides = [1, 1]} : vector<6x32xf32> to vector<1x32xf32>
    %136 = vector.extract_strided_slice %133 {offsets = [2, 0], sizes = [1, 32], strides = [1, 1]} : vector<6x32xf32> to vector<1x32xf32>
    %137 = vector.extract_strided_slice %133 {offsets = [3, 0], sizes = [1, 32], strides = [1, 1]} : vector<6x32xf32> to vector<1x32xf32>
    %138 = vector.extract_strided_slice %133 {offsets = [4, 0], sizes = [1, 32], strides = [1, 1]} : vector<6x32xf32> to vector<1x32xf32>
    %139 = vector.extract_strided_slice %133 {offsets = [5, 0], sizes = [1, 32], strides = [1, 1]} : vector<6x32xf32> to vector<1x32xf32>
    %c1_52 = arith.constant 1 : index
    %c0_53 = arith.constant 0 : index
    %c0_54 = arith.constant 0 : index
    %140 = vector.load %arg2[%c1_52, %c0_53, %c0_54] : memref<2x32x96xf32, #tpu.memory_space<vmem>>, vector<1x32x96xf32>
    %141 = vector.shape_cast %140 : vector<1x32x96xf32> to vector<32x96xf32>
    %cst_55 = arith.constant dense<0.000000e+00> : vector<8x96xf32>
    %142 = tpu.matmul %131, %141, %cst_55 {dimension_numbers = #tpu.dot_dimension_numbers<[1], [0], [0], [1], [0, 0, 1, 1], [], []>} : vector<8x32xf32>, vector<32x96xf32>, vector<8x96xf32> -> vector<8x96xf32>
    %c1_56 = arith.constant 1 : index
    %c0_57 = arith.constant 0 : index
    %c0_58 = arith.constant 0 : index
    %143 = vector.load %arg3[%c1_56, %c0_57, %c0_58] : memref<2x1x96xf32, #tpu.memory_space<vmem>>, vector<1x1x96xf32>
    %144 = vector.shape_cast %143 : vector<1x1x96xf32> to vector<1x96xf32>
    %145 = vector.broadcast %144 : vector<1x96xf32> to vector<8x96xf32>
    %146 = arith.addf %142, %145 : vector<8x96xf32>
    %147 = vector.extract_strided_slice %146 {offsets = [0, 0], sizes = [8, 8], strides = [1, 1]} : vector<8x96xf32> to vector<8x8xf32>
    %148 = vector.extract_strided_slice %146 {offsets = [0, 32], sizes = [8, 8], strides = [1, 1]} : vector<8x96xf32> to vector<8x8xf32>
    %cst_59 = arith.constant dense<0.000000e+00> : vector<8x8xf32>
    %149 = tpu.matmul %147, %148, %cst_59 {dimension_numbers = #tpu.dot_dimension_numbers<[1], [1], [0], [0], [0, 0, 1, 0], [], []>} : vector<8x8xf32>, vector<8x8xf32>, vector<8x8xf32> -> vector<8x8xf32>
    %150 = vector.extract_strided_slice %1 {offsets = [0, 0, 0], sizes = [1, 8, 8], strides = [1, 1, 1]} : vector<4x8x8xf32> to vector<1x8x8xf32>
    %151 = vector.shape_cast %150 : vector<1x8x8xf32> to vector<8x8xf32>
    %152 = arith.addf %149, %151 : vector<8x8xf32>
    %153 = vector.extract_strided_slice %146 {offsets = [0, 8], sizes = [8, 8], strides = [1, 1]} : vector<8x96xf32> to vector<8x8xf32>
    %154 = vector.extract_strided_slice %146 {offsets = [0, 40], sizes = [8, 8], strides = [1, 1]} : vector<8x96xf32> to vector<8x8xf32>
    %cst_60 = arith.constant dense<0.000000e+00> : vector<8x8xf32>
    %155 = tpu.matmul %153, %154, %cst_60 {dimension_numbers = #tpu.dot_dimension_numbers<[1], [1], [0], [0], [0, 0, 1, 0], [], []>} : vector<8x8xf32>, vector<8x8xf32>, vector<8x8xf32> -> vector<8x8xf32>
    %156 = vector.extract_strided_slice %1 {offsets = [1, 0, 0], sizes = [1, 8, 8], strides = [1, 1, 1]} : vector<4x8x8xf32> to vector<1x8x8xf32>
    %157 = vector.shape_cast %156 : vector<1x8x8xf32> to vector<8x8xf32>
    %158 = arith.addf %155, %157 : vector<8x8xf32>
    %159 = vector.extract_strided_slice %146 {offsets = [0, 16], sizes = [8, 8], strides = [1, 1]} : vector<8x96xf32> to vector<8x8xf32>
    %160 = vector.extract_strided_slice %146 {offsets = [0, 48], sizes = [8, 8], strides = [1, 1]} : vector<8x96xf32> to vector<8x8xf32>
    %cst_61 = arith.constant dense<0.000000e+00> : vector<8x8xf32>
    %161 = tpu.matmul %159, %160, %cst_61 {dimension_numbers = #tpu.dot_dimension_numbers<[1], [1], [0], [0], [0, 0, 1, 0], [], []>} : vector<8x8xf32>, vector<8x8xf32>, vector<8x8xf32> -> vector<8x8xf32>
    %162 = vector.extract_strided_slice %1 {offsets = [2, 0, 0], sizes = [1, 8, 8], strides = [1, 1, 1]} : vector<4x8x8xf32> to vector<1x8x8xf32>
    %163 = vector.shape_cast %162 : vector<1x8x8xf32> to vector<8x8xf32>
    %164 = arith.addf %161, %163 : vector<8x8xf32>
    %165 = vector.extract_strided_slice %146 {offsets = [0, 24], sizes = [8, 8], strides = [1, 1]} : vector<8x96xf32> to vector<8x8xf32>
    %166 = vector.extract_strided_slice %146 {offsets = [0, 56], sizes = [8, 8], strides = [1, 1]} : vector<8x96xf32> to vector<8x8xf32>
    %cst_62 = arith.constant dense<0.000000e+00> : vector<8x8xf32>
    %167 = tpu.matmul %165, %166, %cst_62 {dimension_numbers = #tpu.dot_dimension_numbers<[1], [1], [0], [0], [0, 0, 1, 0], [], []>} : vector<8x8xf32>, vector<8x8xf32>, vector<8x8xf32> -> vector<8x8xf32>
    %168 = vector.extract_strided_slice %1 {offsets = [3, 0, 0], sizes = [1, 8, 8], strides = [1, 1, 1]} : vector<4x8x8xf32> to vector<1x8x8xf32>
    %169 = vector.shape_cast %168 : vector<1x8x8xf32> to vector<8x8xf32>
    %170 = arith.addf %167, %169 : vector<8x8xf32>
    %171 = tpu.concatenate %152, %158, %164, %170 in 0 : vector<8x8xf32>, vector<8x8xf32>, vector<8x8xf32>, vector<8x8xf32> -> vector<32x8xf32>
    %cst_63 = arith.constant dense<0xFF800000> : vector<32xf32>
    %172 = vector.multi_reduction <maximumf>, %171, %cst_63 [1] : vector<32x8xf32> to vector<32xf32>
    %173 = vector.shape_cast %172 : vector<32xf32> to vector<32x1xf32>
    %174 = vector.broadcast %173 : vector<32x1xf32> to vector<32x8xf32>
    %175 = arith.subf %171, %174 : vector<32x8xf32>
    %176 = math.exp %175 : vector<32x8xf32>
    %cst_64 = arith.constant dense<0.000000e+00> : vector<32xf32>
    %177 = vector.multi_reduction <add>, %176, %cst_64 [1] : vector<32x8xf32> to vector<32xf32>
    %178 = vector.shape_cast %177 : vector<32xf32> to vector<32x1xf32>
    %179 = tpu.reciprocal %178 {approx = true} : vector<32x1xf32> -> vector<32x1xf32>
    %180 = vector.broadcast %179 : vector<32x1xf32> to vector<32x8xf32>
    %181 = arith.mulf %176, %180 : vector<32x8xf32>
    %182 = vector.extract_strided_slice %181 {offsets = [0, 0], sizes = [8, 8], strides = [1, 1]} : vector<32x8xf32> to vector<8x8xf32>
    %183 = vector.extract_strided_slice %146 {offsets = [0, 64], sizes = [8, 8], strides = [1, 1]} : vector<8x96xf32> to vector<8x8xf32>
    %cst_65 = arith.constant dense<0.000000e+00> : vector<8x8xf32>
    %184 = tpu.matmul %182, %183, %cst_65 {dimension_numbers = #tpu.dot_dimension_numbers<[1], [0], [0], [1], [0, 0, 1, 1], [], []>} : vector<8x8xf32>, vector<8x8xf32>, vector<8x8xf32> -> vector<8x8xf32>
    %185 = vector.extract_strided_slice %181 {offsets = [8, 0], sizes = [8, 8], strides = [1, 1]} : vector<32x8xf32> to vector<8x8xf32>
    %186 = vector.extract_strided_slice %146 {offsets = [0, 72], sizes = [8, 8], strides = [1, 1]} : vector<8x96xf32> to vector<8x8xf32>
    %cst_66 = arith.constant dense<0.000000e+00> : vector<8x8xf32>
    %187 = tpu.matmul %185, %186, %cst_66 {dimension_numbers = #tpu.dot_dimension_numbers<[1], [0], [0], [1], [0, 0, 1, 1], [], []>} : vector<8x8xf32>, vector<8x8xf32>, vector<8x8xf32> -> vector<8x8xf32>
    %188 = vector.extract_strided_slice %181 {offsets = [16, 0], sizes = [8, 8], strides = [1, 1]} : vector<32x8xf32> to vector<8x8xf32>
    %189 = vector.extract_strided_slice %146 {offsets = [0, 80], sizes = [8, 8], strides = [1, 1]} : vector<8x96xf32> to vector<8x8xf32>
    %cst_67 = arith.constant dense<0.000000e+00> : vector<8x8xf32>
    %190 = tpu.matmul %188, %189, %cst_67 {dimension_numbers = #tpu.dot_dimension_numbers<[1], [0], [0], [1], [0, 0, 1, 1], [], []>} : vector<8x8xf32>, vector<8x8xf32>, vector<8x8xf32> -> vector<8x8xf32>
    %191 = vector.extract_strided_slice %181 {offsets = [24, 0], sizes = [8, 8], strides = [1, 1]} : vector<32x8xf32> to vector<8x8xf32>
    %192 = vector.extract_strided_slice %146 {offsets = [0, 88], sizes = [8, 8], strides = [1, 1]} : vector<8x96xf32> to vector<8x8xf32>
    %cst_68 = arith.constant dense<0.000000e+00> : vector<8x8xf32>
    %193 = tpu.matmul %191, %192, %cst_68 {dimension_numbers = #tpu.dot_dimension_numbers<[1], [0], [0], [1], [0, 0, 1, 1], [], []>} : vector<8x8xf32>, vector<8x8xf32>, vector<8x8xf32> -> vector<8x8xf32>
    %194 = tpu.concatenate %184, %187, %190, %193 in 1 : vector<8x8xf32>, vector<8x8xf32>, vector<8x8xf32>, vector<8x8xf32> -> vector<8x32xf32>
    %c1_69 = arith.constant 1 : index
    %c0_70 = arith.constant 0 : index
    %c0_71 = arith.constant 0 : index
    %195 = vector.load %arg4[%c1_69, %c0_70, %c0_71] : memref<2x32x32xf32, #tpu.memory_space<vmem>>, vector<1x32x32xf32>
    %196 = vector.shape_cast %195 : vector<1x32x32xf32> to vector<32x32xf32>
    %cst_72 = arith.constant dense<0.000000e+00> : vector<8x32xf32>
    %197 = tpu.matmul %194, %196, %cst_72 {dimension_numbers = #tpu.dot_dimension_numbers<[1], [0], [0], [1], [0, 0, 1, 1], [], []>} : vector<8x32xf32>, vector<32x32xf32>, vector<8x32xf32> -> vector<8x32xf32>
    %198 = vector.broadcast %134 : vector<1x32xf32> to vector<8x32xf32>
    %199 = arith.addf %197, %198 : vector<8x32xf32>
    %200 = arith.addf %131, %199 : vector<8x32xf32>
    %cst_73 = arith.constant dense<0.000000e+00> : vector<8xf32>
    %201 = vector.multi_reduction <add>, %200, %cst_73 [1] : vector<8x32xf32> to vector<8xf32>
    %202 = vector.shape_cast %201 : vector<8xf32> to vector<8x1xf32>
    %cst_74 = arith.constant 3.200000e+01 : f32
    %203 = vector.broadcast %cst_74 : f32 to vector<8x1xf32>
    %204 = arith.divf %202, %203 : vector<8x1xf32>
    %205 = vector.broadcast %204 : vector<8x1xf32> to vector<8x32xf32>
    %206 = arith.subf %200, %205 : vector<8x32xf32>
    %207 = arith.mulf %206, %206 : vector<8x32xf32>
    %cst_75 = arith.constant dense<0.000000e+00> : vector<8xf32>
    %208 = vector.multi_reduction <add>, %207, %cst_75 [1] : vector<8x32xf32> to vector<8xf32>
    %209 = vector.shape_cast %208 : vector<8xf32> to vector<8x1xf32>
    %cst_76 = arith.constant 3.200000e+01 : f32
    %210 = vector.broadcast %cst_76 : f32 to vector<8x1xf32>
    %211 = arith.divf %209, %210 : vector<8x1xf32>
    %212 = vector.broadcast %204 : vector<8x1xf32> to vector<8x32xf32>
    %213 = arith.subf %200, %212 : vector<8x32xf32>
    %cst_77 = arith.constant 9.99999974E-6 : f32
    %214 = vector.broadcast %cst_77 : f32 to vector<8x1xf32>
    %215 = arith.addf %211, %214 : vector<8x1xf32>
    %216 = math.rsqrt %215 : vector<8x1xf32>
    %217 = vector.broadcast %216 : vector<8x1xf32> to vector<8x32xf32>
    %218 = arith.mulf %213, %217 : vector<8x32xf32>
    %219 = vector.broadcast %135 : vector<1x32xf32> to vector<8x32xf32>
    %220 = arith.mulf %218, %219 : vector<8x32xf32>
    %221 = vector.broadcast %136 : vector<1x32xf32> to vector<8x32xf32>
    %222 = arith.addf %220, %221 : vector<8x32xf32>
    %c1_78 = arith.constant 1 : index
    %c0_79 = arith.constant 0 : index
    %c0_80 = arith.constant 0 : index
    %223 = vector.load %arg5[%c1_78, %c0_79, %c0_80] : memref<2x32x64xf32, #tpu.memory_space<vmem>>, vector<1x32x64xf32>
    %224 = vector.shape_cast %223 : vector<1x32x64xf32> to vector<32x64xf32>
    %cst_81 = arith.constant dense<0.000000e+00> : vector<8x64xf32>
    %225 = tpu.matmul %222, %224, %cst_81 {dimension_numbers = #tpu.dot_dimension_numbers<[1], [0], [0], [1], [0, 0, 1, 1], [], []>} : vector<8x32xf32>, vector<32x64xf32>, vector<8x64xf32> -> vector<8x64xf32>
    %c1_82 = arith.constant 1 : index
    %c0_83 = arith.constant 0 : index
    %c0_84 = arith.constant 0 : index
    %226 = vector.load %arg6[%c1_82, %c0_83, %c0_84] : memref<2x1x64xf32, #tpu.memory_space<vmem>>, vector<1x1x64xf32>
    %227 = vector.shape_cast %226 : vector<1x1x64xf32> to vector<1x64xf32>
    %228 = vector.broadcast %227 : vector<1x64xf32> to vector<8x64xf32>
    %229 = arith.addf %225, %228 : vector<8x64xf32>
    %cst_85 = arith.constant 0.000000e+00 : f32
    %230 = vector.broadcast %cst_85 : f32 to vector<8x64xf32>
    %231 = arith.maximumf %229, %230 : vector<8x64xf32>
    %c1_86 = arith.constant 1 : index
    %c0_87 = arith.constant 0 : index
    %c0_88 = arith.constant 0 : index
    %232 = vector.load %arg7[%c1_86, %c0_87, %c0_88] : memref<2x64x32xf32, #tpu.memory_space<vmem>>, vector<1x64x32xf32>
    %233 = vector.shape_cast %232 : vector<1x64x32xf32> to vector<64x32xf32>
    %cst_89 = arith.constant dense<0.000000e+00> : vector<8x32xf32>
    %234 = tpu.matmul %231, %233, %cst_89 {dimension_numbers = #tpu.dot_dimension_numbers<[1], [0], [0], [1], [0, 0, 1, 1], [], []>} : vector<8x64xf32>, vector<64x32xf32>, vector<8x32xf32> -> vector<8x32xf32>
    %235 = vector.broadcast %137 : vector<1x32xf32> to vector<8x32xf32>
    %236 = arith.addf %234, %235 : vector<8x32xf32>
    %237 = arith.addf %222, %236 : vector<8x32xf32>
    %cst_90 = arith.constant dense<0.000000e+00> : vector<8xf32>
    %238 = vector.multi_reduction <add>, %237, %cst_90 [1] : vector<8x32xf32> to vector<8xf32>
    %239 = vector.shape_cast %238 : vector<8xf32> to vector<8x1xf32>
    %cst_91 = arith.constant 3.200000e+01 : f32
    %240 = vector.broadcast %cst_91 : f32 to vector<8x1xf32>
    %241 = arith.divf %239, %240 : vector<8x1xf32>
    %242 = vector.broadcast %241 : vector<8x1xf32> to vector<8x32xf32>
    %243 = arith.subf %237, %242 : vector<8x32xf32>
    %244 = arith.mulf %243, %243 : vector<8x32xf32>
    %cst_92 = arith.constant dense<0.000000e+00> : vector<8xf32>
    %245 = vector.multi_reduction <add>, %244, %cst_92 [1] : vector<8x32xf32> to vector<8xf32>
    %246 = vector.shape_cast %245 : vector<8xf32> to vector<8x1xf32>
    %cst_93 = arith.constant 3.200000e+01 : f32
    %247 = vector.broadcast %cst_93 : f32 to vector<8x1xf32>
    %248 = arith.divf %246, %247 : vector<8x1xf32>
    %249 = vector.broadcast %241 : vector<8x1xf32> to vector<8x32xf32>
    %250 = arith.subf %237, %249 : vector<8x32xf32>
    %cst_94 = arith.constant 9.99999974E-6 : f32
    %251 = vector.broadcast %cst_94 : f32 to vector<8x1xf32>
    %252 = arith.addf %248, %251 : vector<8x1xf32>
    %253 = math.rsqrt %252 : vector<8x1xf32>
    %254 = vector.broadcast %253 : vector<8x1xf32> to vector<8x32xf32>
    %255 = arith.mulf %250, %254 : vector<8x32xf32>
    %256 = vector.broadcast %138 : vector<1x32xf32> to vector<8x32xf32>
    %257 = arith.mulf %255, %256 : vector<8x32xf32>
    %258 = vector.broadcast %139 : vector<1x32xf32> to vector<8x32xf32>
    %259 = arith.addf %257, %258 : vector<8x32xf32>
    %cst_95 = arith.constant 0.000000e+00 : f32
    %260 = vector.broadcast %cst_95 : f32 to vector<8x32xf32>
    %261 = arith.maximumf %259, %260 : vector<8x32xf32>
    %c0_96 = arith.constant 0 : index
    %c0_97 = arith.constant 0 : index
    %262 = vector.load %arg9[%c0_96, %c0_97] : memref<32x16xf32, #tpu.memory_space<vmem>>, vector<32x16xf32>
    %cst_98 = arith.constant dense<0.000000e+00> : vector<8x16xf32>
    %263 = tpu.matmul %261, %262, %cst_98 {dimension_numbers = #tpu.dot_dimension_numbers<[1], [0], [0], [1], [0, 0, 1, 1], [], []>} : vector<8x32xf32>, vector<32x16xf32>, vector<8x16xf32> -> vector<8x16xf32>
    %c0_99 = arith.constant 0 : index
    %c0_100 = arith.constant 0 : index
    %264 = vector.load %arg10[%c0_99, %c0_100] : memref<1x16xf32, #tpu.memory_space<vmem>>, vector<1x16xf32>
    %265 = vector.broadcast %264 : vector<1x16xf32> to vector<8x16xf32>
    %266 = arith.addf %263, %265 : vector<8x16xf32>
    %c0_101 = arith.constant 0 : index
    %c0_102 = arith.constant 0 : index
    %267 = vector.load %arg11[%c0_101, %c0_102] : memref<8x16xf32, #tpu.memory_space<vmem>>, vector<8x16xf32>
    tpu.vector_store %arg11[%c0_101, %c0_102], %266 {strides = array<i32>} : memref<8x16xf32, #tpu.memory_space<vmem>>, vector<8x16xf32>,
    return
  }
}

</mosaic_0001>

<bundles_post_ra>
// kernel: graphormer_encoder.1
= control target key start
LH: loop header
LB: loop body
LE: loop exit
PB: predicated region body
PF: predicated region fallthrough
CT: control target
= control target key end

     0   :  { %16 = vsyncpa [#allocation3], 0  ;;  %s1691_s0 = inlined_call_operand.hbm [shape: f32[8,32], index: 0, kind: input, shape index: {}]   ;;  %s1692_s1 = inlined_call_operand.hbm [shape: f32[4,8,8], index: 1, kind: input, shape index: {}]   ;;  %s1693_s2 = inlined_call_operand.vmem [shape: f32[2,32,96], index: 2, kind: input, shape index: {}]   ;;  %s1694_s3 = inlined_call_operand.vmem [shape: f32[2,1,96], index: 3, kind: input, shape index: {}]   ;;  %s1695_s4 = inlined_call_operand.vmem [shape: f32[2,32,32], index: 4, kind: input, shape index: {}]   ;;  %s1696_s5 = inlined_call_operand.vmem [shape: f32[2,32,64], index: 5, kind: input, shape index: {}]   ;;  %s1697_s6 = inlined_call_operand.hbm [shape: f32[2,1,64], index: 6, kind: input, shape index: {}]   ;;  %s1698_s7 = inlined_call_operand.vmem [shape: f32[2,64,32], index: 7, kind: input, shape index: {}]   ;;  %s1699_s8 = inlined_call_operand.vmem [shape: f32[2,6,32], index: 8, kind: input, shape index: {}]   ;;  %s1700_s9 = inlined_call_operand.vmem [shape: f32[32,16], index: 9, kind: input, shape index: {}]   ;;  %s1701_s10 = inlined_call_operand.vmem [shape: f32[1,16], index: 10, kind: input, shape index: {}]   ;;  %s1702_s11 = inlined_call_operand.hbm [shape: f32[8,16], index: 11, kind: output, shape index: {}]  }
   0x1   :  { %17 = vsyncpa [#allocation6], 0  ;;  %s34_s19 = sshll.u32 %s1692_s1, 4  ;;  %s35_s19 = int_to_ptr.hbm [resolvable:$true] %s34_s19 }
   0x2   :  { %18 = vsyncpa [#allocation4], 0  ;;  %s1289_s20 = smov [#allocation5]   ;;  %s24_s24 = sshll.u32 %s1691_s0, 4  ;;  %s25_s24 = int_to_ptr.hbm [resolvable:$true] %s24_s24 }
   0x3   :  { %s36_s21 = sshll.u32 %s1289_s20, 4  ;;  %s1290_s25 = smov 128   ;;  %s37_s21 = int_to_ptr.vmem [resolvable:$true] %s36_s21 }
   0x4   :  { %s1291_s26 = smov 8   ;;  %s1292_s27 = smov [#allocation2]  }
   0x5   :  { %42 = dma.hbm_to_vmem [thread:$0]  %s35_s19, 512, %s37_s21, [#allocation6], %s1290_s25, %s1290_s25, %s1291_s26  }
   0x6   :  { %s26_s28 = sshll.u32 %s1292_s27, 4  ;;  %s55_s1 = sshll.u32 %s1697_s6, 4  ;;  %s27_s28 = int_to_ptr.vmem [resolvable:$true] %s26_s28  ;;  %s56_s1 = int_to_ptr.hbm [resolvable:$true] %s55_s1 }
   0x7   :  { %29 = dma.hbm_to_vmem [thread:$0]  %s25_s24, 128, %s27_s28, [#allocation3]  }
   0x8   :  { %s1293_s12 = smov [#allocation7]   ;;  %s1704_s14 = smov 16  }
   0x9   :  { %s57_s13 = sshll.u32 %s1293_s12, 4  ;;  %s1295_s15 = smov 1   ;;  %s58_s13 = int_to_ptr.vmem [resolvable:$true] %s57_s13 }
   0xa   :  { %63 = dma.hbm_to_vmem [thread:$0]  %s56_s1, 32, %s58_s13, [#allocation6], %s1704_s14, %s1704_s14, %s1295_s15  }
   0xb   :  { %1283 = dma.done.wait [#allocation3], 128  }
   0xc   :  { %1284 = vsyncadd [#allocation3], 4294967168 }
   0xd   :  { %1285 = dma.done.wait [#allocation6], 544  }
   0xe   :  { %1286 = vsyncadd [#allocation6], 4294966752  ;;  %v93_v0 = vld [vmem:[%s1693_s2 + $0x18] sm:$0xff]  ;;  %v92_v1 = vld [vmem:[%s1693_s2 + $0x10] sm:$0xff]  ;;  %vm98_vm0 = vcmask 261120   ;;  %s1296_s24 = smov 112  }
   0xf   :  { %114 = vmatpush.msra.mxu0 %v93_v0  ;;  %v91_v2 = vld [vmem:[%s1693_s2 + $0x8] sm:$0xff]  ;;  %v90_v3 = vld [vmem:[%s1693_s2] sm:$0xff]  ;;  %s1297_s25 = smov 120   ;;  %s1298_s27 = smov 96   ;;  %vm125_vm1 = vcmask 64512   ;;  %v1428_v17 = vld [vmem:[#allocation5 + $0x8] sm:$0xff] }
  0x10   :  { %v1394_v4 = vld [vmem:[#allocation2] sm:$0xff]  ;;  %s1299_s28 = smov 72   ;;  %s1300_s29 = smov 80   ;;  %v1430_v18 = vld [vmem:[#allocation5 + $0x10] sm:$0xff]  ;;  %v1438_v28 = vld [vmem:[#allocation5] sm:$0xff]  ;;  %vm395_vm2 = vcmask 130048  }
  0x11   :  { %115 = vmatpush.msra.mxu0 %v92_v1  ;;  %v1140_v5 = vld [vmem:[%s1694_s3] ss:$0 sm:$0xff]  ;;  %s1301_s30 = smov 88   ;;  %s1302_s1 = smov 104   ;;  %vm397_vm3 = vcmask 195584   ;;  %vm502_vm8 = vcmask 523264  }
  0x12   :  { %v1426_v16 = vld [vmem:[#allocation5 + $0x18] sm:$0xff]  ;;  %s1303_s12 = smov 40   ;;  %s1304_s13 = smov 48  }
  0x13   :  { %116 = vmatpush.msra.mxu0 %v91_v2  ;;  %s1305_s15 = smov 56   ;;  %s1306_s0 = smov 64  }
  0x14   :  { %s1703_s16 = smov 24   ;;  %s1309_s23 = smov [#allocation8]  }
  0x15   :  { %117 = vmatpush.msra.mxu0 %v90_v3  ;;  %s1053_s17 = sshll.u32 %s1702_s11, 4  ;;  %s1054_s17 = int_to_ptr.hbm [resolvable:$true] %s1053_s17 }
  0x16   :  { %1064 = vmatmul.msk.f32.vlgmr.msra.gmra.mxu0 %vm98_vm0, %v1394_v4 }
  0x93   :  { %v119_v6 = vpop.f32.mrf.mxu0 }
  0x94   :  { %v1401_v7 = vadd.f32 %v1140_v5, %v119_v6 }
  0x96   :  { %178 = vrot.lane.b32.xlu2 %v1401_v7, %s1296_s24  ;;  %150 = vrot.lane.b32.xlu1 %v1401_v7, %s1297_s25 }
  0x97   :  { %123 = vrot.lane.b32.xlu0 %v1401_v7, %s1298_s27 }
  0x9e   :  { %208 = vrot.lane.b32.xlu2 %v1401_v7, %s1299_s28  ;;  %180 = vrot.lane.b32.xlu1 %v1401_v7, %s1300_s29 }
  0x9f   :  { %152 = vrot.lane.b32.xlu0 %v1401_v7, %s1301_s30 }
  0xa7   :  { %206 = vrot.lane.b32.xlu0 %v1401_v7, %s1302_s1 }
  0xf0   :  { %v179_v8 = vpop.permute.xlu2 %178 }
  0xf8   :  { %v209_v9 = vpop.permute.xlu2 %208 }
  0xf9   :  { %1071 = vmatpush.xpose.msk.msra.mxu1 %vm125_vm1, %v209_v9  ;;  %v400_v9 = vld [vmem:[%s1695_s4 + $0x8] sm:$0xff] }
 0x108   :  { %v151_v10 = vpop.permute.xlu1 %150 }
 0x109   :  { %v124_v11 = vpop.permute.xlu0 %123 }
 0x10a   :  { %1065 = vmatpush.xpose.msk.msra.mxu3 %vm125_vm1, %v124_v11 }
 0x10d   :  { %1066 = vmatmul.msk.f32.vlgmr.msra.gmra.mxu3 %vm125_vm1, %v1401_v7 }
 0x110   :  { %v181_v12 = vpop.permute.xlu1 %180 }
 0x111   :  { %v153_v13 = vpop.permute.xlu0 %152  ;;  %1069 = vmatpush.xpose.msk.msrb.mxu3 %vm125_vm1, %v181_v12 }
 0x112   :  { %1067 = vmatpush.xpose.msk.msra.mxu2 %vm125_vm1, %v153_v13 }
 0x115   :  { %1068 = vmatmul.msk.f32.vlgmr.msra.gmra.mxu2 %vm125_vm1, %v151_v10  ;;  %1070 = vmatmul.msk.f32.vlgmr.msrb.gmra.mxu3 %vm125_vm1, %v179_v8  ;;  %v401_v8 = vld [vmem:[%s1695_s4 + $0x10] sm:$0xff]  ;;  %v399_v10 = vld [vmem:[%s1695_s4] sm:$0xff] }
 0x119   :  { %v207_v14 = vpop.permute.xlu0 %206 }
 0x11a   :  { %1072 = vmatmul.msk.f32.vlgmr.msra.gmra.mxu1 %vm125_vm1, %v207_v14 }
 0x190   :  { %v147_v15 = vpop.f32.mrf.mxu3 }
 0x191   :  { %v148_v29 = vadd.f32 %v147_v15, %v1438_v28 }
 0x193   :  { %v234_v30 = vsel %vm125_vm1, %v148_v29, -inf }
 0x197   :  { %v231_v19 = vpop.f32.mrf.mxu1 }
 0x198   :  { %v232_v20 = vadd.f32 %v231_v19, %v1426_v16  ;;  %v175_v21 = vpop.f32.mrf.mxu2  ;;  %v203_v22 = vpop.f32.mrf.mxu3 }
 0x199   :  { %v176_v23 = vadd.f32 %v175_v21, %v1428_v17  ;;  %v204_v24 = vadd.f32 %v203_v22, %v1430_v18  ;;  %v1480_v21 = vld [vmem:[%s1699_s8] sm:$0x3f] }
 0x19a   :  { %v243_v25 = vsel %vm125_vm1, %v232_v20, -inf  ;;  %v403_v22 = vperm.slane %v1480_v21, 0 }
 0x19b   :  { %244 = vmax.xlane.f32.xlu0 %v243_v25  ;;  %v240_v26 = vsel %vm125_vm1, %v204_v24, -inf  ;;  %v237_v27 = vsel %vm125_vm1, %v176_v23, -inf }
 0x19c   :  { %241 = vmax.xlane.f32.xlu2 %v240_v26  ;;  %238 = vmax.xlane.f32.xlu1 %v237_v27  ;;  %v1308_v27 = vmov 32.0  }
 0x1a4   :  { %235 = vmax.xlane.f32.xlu2 %v234_v30 }
 0x20e   :  { %v245_v31 = vpop.xlane.xlu0 %244 }
 0x20f   :  { %v249_v32 = vsub.f32 %v232_v20, %v245_v31  ;;  %v242_v33 = vpop.xlane.xlu2 %241  ;;  %v239_v34 = vpop.xlane.xlu1 %238 }
 0x210   :  { %v248_v35 = vsub.f32 %v204_v24, %v242_v33  ;;  %v247_v36 = vsub.f32 %v176_v23, %v239_v34 }
 0x211   :  { %v256_v37 = vmul.f32 1.442695, %v249_v32 }
 0x212   :  { %v254_v38 = vmul.f32 1.442695, %v248_v35  ;;  %v252_v39 = vmul.f32 1.442695, %v247_v36 }
 0x213   :  { %1145 = vpow2.f32 %v256_v37 }
 0x214   :  { %1147 = vpow2.f32 %v254_v38 }
 0x215   :  { %1149 = vpow2.f32 %v252_v39  ;;  %v464_v39 = vld [vmem:[%s1696_s5 + $0x18] sm:$0xff] }
 0x217   :  { %v236_v46 = vpop.xlane.xlu2 %235 }
 0x218   :  { %v246_v47 = vsub.f32 %v148_v29, %v236_v46 }
 0x219   :  { %v1146_v40 = vpop.eup %1145 }
 0x21a   :  { %v1148_v41 = vpop.eup %1147  ;;  %v267_v42 = vsel %vm125_vm1, %v1146_v40, 0.0  ;;  %v250_v48 = vmul.f32 1.442695, %v246_v47 }
 0x21b   :  { %v1150_v43 = vpop.eup %1149  ;;  %268 = vadd.xlane.f32.xlu0 %v267_v42  ;;  %v264_v44 = vsel %vm125_vm1, %v1148_v41, 0.0  ;;  %v461_v42 = vld [vmem:[%s1696_s5] sm:$0xff] }
 0x21c   :  { %265 = vadd.xlane.f32.xlu2 %v264_v44  ;;  %v261_v45 = vsel %vm125_vm1, %v1150_v43, 0.0  ;;  %1151 = vpow2.f32 %v250_v48  ;;  %v499_v44 = vld [vmem:[%s1698_s7 + $0x30] sm:$0xff]  ;;  %v497_v48 = vld [vmem:[%s1698_s7 + $0x20] sm:$0xff] }
 0x21d   :  { %262 = vadd.xlane.f32.xlu1 %v261_v45  ;;  %v498_v45 = vld [vmem:[%s1698_s7 + $0x28] sm:$0xff] }
 0x222   :  { %v1152_v49 = vpop.eup %1151 }
 0x223   :  { %v258_v50 = vsel %vm125_vm1, %v1152_v49, 0.0 }
 0x22f   :  { %356 = vrot.lane.b32.xlu0 %v1401_v7, %s1303_s12 }
 0x234   :  { %330 = vrot.lane.b32.xlu2 %v1401_v7, %s1304_s13 }
 0x236   :  { %304 = vrot.lane.b32.xlu1 %v1401_v7, %s1305_s15 }
 0x237   :  { %278 = vrot.lane.b32.xlu0 %v1401_v7, %s1306_s0  ;;  %v402_v7 = vld [vmem:[%s1695_s4 + $0x18] sm:$0xff] }
 0x260   :  { %259 = vadd.xlane.f32.xlu1 %v258_v50  ;;  %v496_v50 = vld [vmem:[%s1698_s7 + $0x18] sm:$0xff] }
 0x28e   :  { %v269_v52 = vpop.xlane.xlu0 %268 }
 0x28f   :  { %v266_v51 = vpop.xlane.xlu2 %265 }
 0x290   :  { %1153 = vrcp.f32 %v266_v51  ;;  %v263_v56 = vpop.xlane.xlu1 %262 }
 0x291   :  { %1155 = vrcp.f32 %v269_v52 }
 0x292   :  { %1157 = vrcp.f32 %v263_v56 }
 0x296   :  { %v1154_v53 = vpop.eup %1153 }
 0x297   :  { %v331_v54 = vpop.permute.xlu2 %330  ;;  %v276_v55 = vmul.f32 %v1154_v53, %v1148_v41  ;;  %v1156_v57 = vpop.eup %1155  ;;  %v462_v41 = vld [vmem:[%s1696_s5 + $0x8] sm:$0xff] }
 0x298   :  { %351 = vmatpush.msrb.mxu0 %v331_v54  ;;  %v277_v59 = vmul.f32 %v1156_v57, %v1146_v40  ;;  %v1158_v60 = vpop.eup %1157  ;;  %v463_v40 = vld [vmem:[%s1696_s5 + $0x10] sm:$0xff]  ;;  %v457_v57 = vperm.slane %v1480_v21, 1 }
 0x299   :  { %1075 = vmatmul.msk.f32.vlgmr.msrb.gmra.mxu0 %vm125_vm1, %v276_v55  ;;  %v275_v61 = vmul.f32 %v1158_v60, %v1150_v43  ;;  %v500_v43 = vld [vmem:[%s1698_s7 + $0x38] sm:$0xff]  ;;  %v459_v60 = vperm.slane %v1480_v21, 2 }
 0x29a   :  { %514 = vmatpush.msra.mxu0 %v500_v43 }
 0x29c   :  { %515 = vmatpush.msra.mxu0 %v499_v44 }
 0x29e   :  { %516 = vmatpush.msra.mxu0 %v498_v45 }
 0x2a0   :  { %517 = vmatpush.msra.mxu0 %v497_v48 }
 0x2a1   :  { %v357_v58 = vpop.permute.xlu0 %356 }
 0x2a2   :  { %377 = vmatpush.msrb.mxu1 %v357_v58  ;;  %518 = vmatpush.msra.mxu0 %v496_v50 }
 0x2a3   :  { %1076 = vmatmul.msk.f32.vlgmr.msrb.gmra.mxu1 %vm125_vm1, %v277_v59 }
 0x2a8   :  { %v305_v62 = vpop.permute.xlu1 %304 }
 0x2a9   :  { %325 = vmatpush.msra.mxu3 %v305_v62  ;;  %v279_v63 = vpop.permute.xlu0 %278 }
 0x2aa   :  { %1074 = vmatmul.msk.f32.vlgmr.msra.gmra.mxu3 %vm125_vm1, %v275_v61  ;;  %299 = vmatpush.msrb.mxu2 %v279_v63  ;;  %v495_v63 = vld [vmem:[%s1698_s7 + $0x10] sm:$0xff] }
 0x2ab   :  { %484 = vmatpush.msrb.mxu3 %v464_v39  ;;  %519 = vmatpush.msra.mxu0 %v495_v63 }
 0x2ac   :  { %419 = vmatpush.msra.mxu2 %v402_v7  ;;  %v501_v7 = vperm.slane %v1480_v21, 3 }
 0x2ad   :  { %485 = vmatpush.msrb.mxu3 %v463_v40 }
 0x2ae   :  { %420 = vmatpush.msra.mxu2 %v401_v8 }
 0x2af   :  { %486 = vmatpush.msrb.mxu3 %v462_v41 }
 0x2b0   :  { %421 = vmatpush.msra.mxu2 %v400_v9 }
 0x2b1   :  { %487 = vmatpush.msrb.mxu3 %v461_v42  ;;  %v1142_v42 = vld [vmem:[%s1694_s3 + $0x1] ss:$0 sm:$0xff]  ;;  %s1705_s3 = smov 16  }
 0x2b2   :  { %422 = vmatpush.msra.mxu2 %v399_v10 }
 0x2d3   :  { %v260_v0 = vpop.xlane.xlu1 %259 }
 0x2d4   :  { %1159 = vrcp.f32 %v260_v0  ;;  %v494_v0 = vld [vmem:[%s1698_s7 + $0x8] sm:$0xff] }
 0x2d5   :  { %1161 = vrcp.f32 %v1308_v27  ;;  %520 = vmatpush.msra.mxu0 %v494_v0 }
 0x2da   :  { %v1160_v1 = vpop.eup %1159 }
 0x2db   :  { %v274_v2 = vmul.f32 %v1160_v1, %v1152_v49  ;;  %v1162_v29 = vpop.eup %1161  ;;  %v493_v1 = vld [vmem:[%s1698_s7] sm:$0xff] }
 0x2dc   :  { %v432_v30 = vmul.f32 32.0, %v1162_v29  ;;  %vm436_vm4 = vweird.f32 %v1162_v29  ;;  %521 = vmatpush.msra.mxu0 %v493_v1 }
 0x2dd   :  { %1073 = vmatmul.msk.f32.vlgmr.msrb.gmra.mxu2 %vm125_vm1, %v274_v2  ;;  %v1141_v2 = vld [vmem:[#allocation7] ss:$0 sm:$0xff] }
 0x2de   :  { %v433_v31 = vsub.f32 1.0, %v432_v30 }
 0x2e0   :  { %v434_v32 = vmul.f32 %v1162_v29, %v433_v31 }
 0x2e2   :  { %v435_v33 = vadd.f32 %v1162_v29, %v434_v32 }
 0x2e4   :  { %v1485_v34 = vsel %vm436_vm4, %v1162_v29, %v435_v33 }
 0x316   :  { %v353_v3 = vpop.f32.mrf.mxu0 }
 0x317   :  { %387 = vrot.lane.b32.xlu0 %v353_v3, %s1704_s14  ;;  %s1051_s14 = sshll.u32 %s1309_s23, 4  ;;  %s1052_s14 = int_to_ptr.vmem [resolvable:$true] %s1051_s14 }
 0x320   :  { %v379_v6 = vpop.f32.mrf.mxu1 }
 0x32d   :  { %v327_v5 = vpop.f32.mrf.mxu3 }
 0x32e   :  { %383 = vrot.lane.b32.xlu2 %v327_v5, %s1291_s26 }
 0x336   :  { %391 = vrot.lane.b32.xlu2 %v379_v6, %s1703_s16 }
 0x360   :  { %v301_v12 = vpop.f32.mrf.mxu2 }
 0x388   :  { %v384_v11 = vpop.permute.xlu2 %383 }
 0x389   :  { %v394_v13 = vsel %vm125_vm1, %v301_v12, %v384_v11  ;;  %v388_v14 = vpop.permute.xlu0 %387 }
 0x38a   :  { %v396_v15 = vsel %vm395_vm2, %v394_v13, %v388_v14 }
 0x390   :  { %v392_v19 = vpop.permute.xlu2 %391 }
 0x391   :  { %v398_v20 = vsel %vm397_vm3, %v396_v15, %v392_v19 }
 0x392   :  { %1077 = vmatmul.msk.f32.vlgmr.msra.gmra.mxu2 %vm98_vm0, %v398_v20  ;;  %v1084_v20 = vld [vmem:[%s1693_s2 + $0x38] sm:$0xff] }
 0x393   :  { %581 = vmatpush.msra.mxu1 %v1084_v20 }
 0x415   :  { %v424_v23 = vpop.f32.mrf.mxu2 }
 0x416   :  { %v425_v24 = vadd.f32 %v424_v23, %v403_v22  ;;  %v1083_v22 = vld [vmem:[%s1693_s2 + $0x30] sm:$0xff]  ;;  %v1082_v23 = vld [vmem:[%s1693_s2 + $0x28] sm:$0xff] }
 0x417   :  { %582 = vmatpush.msra.mxu1 %v1083_v22 }
 0x418   :  { %v427_v25 = vadd.f32 %v425_v24, %v1394_v4  ;;  %v1081_v24 = vld [vmem:[%s1693_s2 + $0x20] sm:$0xff] }
 0x419   :  { %583 = vmatpush.msra.mxu1 %v1082_v23 }
 0x41a   :  { %v428_v26 = vsel %vm98_vm0, %v427_v25, 0.0 }
 0x41b   :  { %429 = vadd.xlane.f32.xlu0 %v428_v26  ;;  %584 = vmatpush.msra.mxu1 %v1081_v24 }
 0x48e   :  { %v430_v35 = vpop.xlane.xlu0 %429 }
 0x48f   :  { %v438_v36 = vmul.f32 %v1485_v34, %v430_v35 }
 0x491   :  { %v439_v37 = vsub.f32 %v427_v25, %v438_v36  ;;  %v549_v36 = vperm.slane %v1480_v21, 4 }
 0x493   :  { %v440_v38 = vmul.f32 %v439_v37, %v439_v37 }
 0x495   :  { %v441_v4 = vsel %vm98_vm0, %v440_v38, 0.0 }
 0x496   :  { %442 = vadd.xlane.f32.xlu2 %v441_v4  ;;  %v551_v4 = vperm.slane %v1480_v21, 5 }
 0x509   :  { %v443_v46 = vpop.xlane.xlu2 %442 }
 0x50a   :  { %v444_v47 = vmul.f32 %v443_v46, %v1485_v34 }
 0x50c   :  { %v445_v49 = vadd.f32 1e-05, %v444_v47 }
 0x50e   :  { %1163 = vrsqrt.f32 %v445_v49  ;;  %vm452_vm6 = vweird.f32 %v445_v49 }
 0x514   :  { %v1164_v51 = vpop.eup %1163 }
 0x515   :  { %v447_v52 = vmul.f32 %v1164_v51, %v445_v49  ;;  %vm453_vm5 = vweird.f32 %v1164_v51 }
 0x516   :  { %vm454_vm7 = vmor %vm452_vm6, %vm453_vm5 }
 0x517   :  { %v448_v53 = vmul.f32 %v1164_v51, %v447_v52 }
 0x519   :  { %v449_v54 = vmul.f32 0.5, %v448_v53 }
 0x51b   :  { %v450_v55 = vsub.f32 1.5, %v449_v54 }
 0x51d   :  { %v451_v56 = vmul.f32 %v1164_v51, %v450_v55 }
 0x51f   :  { %v455_v58 = vsel %vm454_vm7, %v1164_v51, %v451_v56 }
 0x520   :  { %v456_v59 = vmul.f32 %v455_v58, %v439_v37 }
 0x522   :  { %v458_v61 = vmul.f32 %v457_v57, %v456_v59 }
 0x524   :  { %v460_v62 = vadd.f32 %v459_v60, %v458_v61 }
 0x526   :  { %1078 = vmatmul.msk.f32.vlgmr.msrb.gmra.mxu3 %vm98_vm0, %v460_v62 }
 0x5a9   :  { %v489_v3 = vpop.f32.mrf.mxu3 }
 0x5aa   :  { %v490_v5 = vadd.f32 %v1141_v2, %v489_v3 }
 0x5ac   :  { %v492_v6 = vmax.f32 %v490_v5, 0.0 }
 0x5ae   :  { %1079 = vmatmul.msk.f32.vlgmr.msra.gmra.mxu0 %vm502_vm8, %v492_v6 }
 0x62b   :  { %v523_v8 = vpop.f32.mrf.mxu0 }
 0x62c   :  { %v524_v9 = vadd.f32 %v523_v8, %v501_v7 }
 0x62e   :  { %v526_v10 = vadd.f32 %v524_v9, %v460_v62 }
 0x630   :  { %v527_v11 = vsel %vm98_vm0, %v526_v10, 0.0 }
 0x631   :  { %528 = vadd.xlane.f32.xlu1 %v527_v11 }
 0x6a4   :  { %v529_v12 = vpop.xlane.xlu1 %528 }
 0x6a5   :  { %v530_v13 = vmul.f32 %v529_v12, %v1485_v34 }
 0x6a7   :  { %v531_v14 = vsub.f32 %v526_v10, %v530_v13 }
 0x6a9   :  { %v532_v15 = vmul.f32 %v531_v14, %v531_v14 }
 0x6ab   :  { %v533_v19 = vsel %vm98_vm0, %v532_v15, 0.0 }
 0x6ac   :  { %534 = vadd.xlane.f32.xlu1 %v533_v19 }
 0x71f   :  { %v535_v25 = vpop.xlane.xlu1 %534 }
 0x720   :  { %v536_v26 = vmul.f32 %v535_v25, %v1485_v34 }
 0x722   :  { %v537_v27 = vadd.f32 1e-05, %v536_v26 }
 0x724   :  { %1165 = vrsqrt.f32 %v537_v27  ;;  %vm544_vm10 = vweird.f32 %v537_v27 }
 0x72a   :  { %v1166_v29 = vpop.eup %1165 }
 0x72b   :  { %v539_v30 = vmul.f32 %v1166_v29, %v537_v27  ;;  %vm545_vm9 = vweird.f32 %v1166_v29 }
 0x72c   :  { %vm546_vm11 = vmor %vm544_vm10, %vm545_vm9 }
 0x72d   :  { %v540_v31 = vmul.f32 %v1166_v29, %v539_v30 }
 0x72f   :  { %v541_v32 = vmul.f32 0.5, %v540_v31 }
 0x731   :  { %v542_v33 = vsub.f32 1.5, %v541_v32 }
 0x733   :  { %v543_v35 = vmul.f32 %v1166_v29, %v542_v33 }
 0x735   :  { %v547_v37 = vsel %vm546_vm11, %v1166_v29, %v543_v35 }
 0x736   :  { %v548_v38 = vmul.f32 %v547_v37, %v531_v14 }
 0x738   :  { %v550_v39 = vmul.f32 %v549_v36, %v548_v38 }
 0x73a   :  { %v1549_v40 = vadd.f32 %v551_v4, %v550_v39 }
 0x73c   :  { %v553_v41 = vmax.f32 %v1549_v40, 0.0  ;;  %v1106_v40 = vld [vmem:[%s1696_s5 + $0x30] sm:$0xff] }
 0x73e   :  { %1086 = vmatmul.msk.f32.vlgmr.msra.gmra.mxu1 %vm98_vm0, %v553_v41 }
 0x7bb   :  { %v586_v43 = vpop.f32.mrf.mxu1 }
 0x7bc   :  { %v587_v44 = vadd.f32 %v1142_v42, %v586_v43  ;;  %v1102_v42 = vld [vmem:[%s1695_s4 + $0x38] sm:$0xff]  ;;  %v1101_v43 = vld [vmem:[%s1695_s4 + $0x30] sm:$0xff] }
 0x7be   :  { %672 = vrot.lane.b32.xlu2 %v587_v44, %s1302_s1  ;;  %674 = vrot.lane.b32.xlu0 %v587_v44, %s1299_s28 }
 0x7bf   :  { %590 = vrot.lane.b32.xlu1 %v587_v44, %s1298_s27 }
 0x7c6   :  { %646 = vrot.lane.b32.xlu2 %v587_v44, %s1300_s29  ;;  %618 = vrot.lane.b32.xlu0 %v587_v44, %s1301_s30 }
 0x7c7   :  { %616 = vrot.lane.b32.xlu1 %v587_v44, %s1297_s25 }
 0x7ce   :  { %644 = vrot.lane.b32.xlu0 %v587_v44, %s1296_s24  ;;  %s1706_s24 = smov 24  }
 0x818   :  { %v673_v21 = vpop.permute.xlu2 %672 }
 0x820   :  { %v647_v45 = vpop.permute.xlu2 %646 }
 0x821   :  { %1091 = vmatpush.xpose.msk.msrb.mxu1 %vm125_vm1, %v647_v45 }
 0x830   :  { %v675_v46 = vpop.permute.xlu0 %674 }
 0x831   :  { %v591_v47 = vpop.permute.xlu1 %590 }
 0x832   :  { %1087 = vmatpush.xpose.msk.msrb.mxu2 %vm125_vm1, %v591_v47 }
 0x835   :  { %1088 = vmatmul.msk.f32.vlgmr.msrb.gmra.mxu2 %vm125_vm1, %v587_v44 }
 0x836   :  { %1093 = vmatpush.xpose.msk.msra.mxu2 %vm125_vm1, %v675_v46 }
 0x838   :  { %v619_v48 = vpop.permute.xlu0 %618 }
 0x839   :  { %1089 = vmatpush.xpose.msk.msra.mxu3 %vm125_vm1, %v619_v48  ;;  %v617_v49 = vpop.permute.xlu1 %616 }
 0x83c   :  { %1090 = vmatmul.msk.f32.vlgmr.msra.gmra.mxu3 %vm125_vm1, %v617_v49 }
 0x83d   :  { %1094 = vmatmul.msk.f32.vlgmr.msra.gmra.mxu2 %vm125_vm1, %v673_v21  ;;  %v1099_v21 = vld [vmem:[%s1695_s4 + $0x20] sm:$0xff] }
 0x840   :  { %v645_v50 = vpop.permute.xlu0 %644 }
 0x841   :  { %1092 = vmatmul.msk.f32.vlgmr.msrb.gmra.mxu1 %vm125_vm1, %v645_v50 }
 0x8b8   :  { %v613_v51 = vpop.f32.mrf.mxu2 }
 0x8b9   :  { %v614_v61 = vadd.f32 %v613_v51, %v1438_v28 }
 0x8bb   :  { %v700_v62 = vsel %vm125_vm1, %v614_v61, -inf }
 0x8be   :  { %v669_v52 = vpop.f32.mrf.mxu1 }
 0x8bf   :  { %v670_v53 = vadd.f32 %v669_v52, %v1430_v18  ;;  %v641_v54 = vpop.f32.mrf.mxu3  ;;  %v1615_v52 = vld [vmem:[%s1699_s8 + $0x8] sm:$0x3f] }
 0x8c0   :  { %v642_v55 = vadd.f32 %v641_v54, %v1428_v17  ;;  %v697_v56 = vpop.f32.mrf.mxu2 }
 0x8c1   :  { %v698_v57 = vadd.f32 %v697_v56, %v1426_v16  ;;  %v706_v58 = vsel %vm125_vm1, %v670_v53, -inf }
 0x8c2   :  { %707 = vmax.xlane.f32.xlu0 %v706_v58  ;;  %v703_v59 = vsel %vm125_vm1, %v642_v55, -inf }
 0x8c3   :  { %v709_v60 = vsel %vm125_vm1, %v698_v57, -inf  ;;  %704 = vmax.xlane.f32.xlu2 %v703_v59 }
 0x8c4   :  { %710 = vmax.xlane.f32.xlu1 %v709_v60 }
 0x8cc   :  { %701 = vmax.xlane.f32.xlu1 %v700_v62 }
 0x935   :  { %v708_v18 = vpop.xlane.xlu0 %707 }
 0x936   :  { %v714_v63 = vsub.f32 %v670_v53, %v708_v18  ;;  %v705_v17 = vpop.xlane.xlu2 %704  ;;  %v868_v53 = vperm.slane %v1615_v52, 0  ;;  %v1107_v18 = vld [vmem:[%s1696_s5 + $0x38] sm:$0xff] }
 0x937   :  { %v713_v0 = vsub.f32 %v642_v55, %v705_v17  ;;  %v711_v1 = vpop.xlane.xlu1 %710  ;;  %v1116_v17 = vld [vmem:[%s1698_s7 + $0x78] sm:$0xff] }
 0x938   :  { %v720_v16 = vmul.f32 1.442695, %v714_v63  ;;  %v715_v2 = vsub.f32 %v698_v57, %v711_v1  ;;  %v1104_v63 = vld [vmem:[%s1696_s5 + $0x20] sm:$0xff]  ;;  %v1114_v1 = vld [vmem:[%s1698_s7 + $0x68] sm:$0xff] }
 0x939   :  { %v718_v3 = vmul.f32 1.442695, %v713_v0  ;;  %v1115_v0 = vld [vmem:[%s1698_s7 + $0x70] sm:$0xff] }
 0x93a   :  { %1167 = vpow2.f32 %v720_v16  ;;  %v722_v5 = vmul.f32 1.442695, %v715_v2 }
 0x93b   :  { %1169 = vpow2.f32 %v718_v3  ;;  %v1113_v3 = vld [vmem:[%s1698_s7 + $0x60] sm:$0xff] }
 0x93c   :  { %1171 = vpow2.f32 %v722_v5 }
 0x93f   :  { %v702_v11 = vpop.xlane.xlu1 %701 }
 0x940   :  { %v1168_v6 = vpop.eup %1167  ;;  %v712_v12 = vsub.f32 %v614_v61, %v702_v11 }
 0x941   :  { %v1170_v7 = vpop.eup %1169  ;;  %v730_v8 = vsel %vm125_vm1, %v1168_v6, 0.0 }
 0x942   :  { %v1172_v28 = vpop.eup %1171  ;;  %731 = vadd.xlane.f32.xlu1 %v730_v8  ;;  %v727_v9 = vsel %vm125_vm1, %v1170_v7, 0.0  ;;  %v716_v13 = vmul.f32 1.442695, %v712_v12  ;;  %v915_v12 = vperm.slane %v1615_v52, 1 }
 0x943   :  { %728 = vadd.xlane.f32.xlu0 %v727_v9  ;;  %v733_v10 = vsel %vm125_vm1, %v1172_v28, 0.0 }
 0x944   :  { %734 = vadd.xlane.f32.xlu2 %v733_v10  ;;  %1173 = vpow2.f32 %v716_v13 }
 0x94a   :  { %v1174_v14 = vpop.eup %1173 }
 0x94b   :  { %v724_v15 = vsel %vm125_vm1, %v1174_v14, 0.0 }
 0x957   :  { %770 = vrot.lane.b32.xlu0 %v587_v44, %s1305_s15 }
 0x95b   :  { %796 = vrot.lane.b32.xlu1 %v587_v44, %s1304_s13 }
 0x95c   :  { %822 = vrot.lane.b32.xlu2 %v587_v44, %s1303_s12 }
 0x964   :  { %744 = vrot.lane.b32.xlu2 %v587_v44, %s1306_s0  ;;  %v1100_v44 = vld [vmem:[%s1695_s4 + $0x28] sm:$0xff] }
 0x981   :  { %725 = vadd.xlane.f32.xlu0 %v724_v15  ;;  %v917_v15 = vperm.slane %v1615_v52, 2 }
 0x9b5   :  { %v732_v25 = vpop.xlane.xlu1 %731 }
 0x9b6   :  { %v729_v20 = vpop.xlane.xlu0 %728 }
 0x9b7   :  { %v735_v19 = vpop.xlane.xlu2 %734 }
 0x9b8   :  { %1175 = vrcp.f32 %v735_v19 }
 0x9b9   :  { %1177 = vrcp.f32 %v729_v20 }
 0x9ba   :  { %1179 = vrcp.f32 %v732_v25  ;;  %v1143_v25 = vld [vmem:[#allocation7 + $0x1] ss:$0 sm:$0xff] }
 0x9be   :  { %v1176_v22 = vpop.eup %1175 }
 0x9bf   :  { %v743_v23 = vmul.f32 %v1176_v22, %v1172_v28  ;;  %v823_v24 = vpop.permute.xlu2 %822  ;;  %v1178_v26 = vpop.eup %1177  ;;  %v1111_v22 = vld [vmem:[%s1698_s7 + $0x50] sm:$0xff] }
 0x9c0   :  { %843 = vmatpush.msrb.mxu2 %v823_v24  ;;  %v741_v29 = vmul.f32 %v1178_v26, %v1170_v7  ;;  %v1180_v31 = vpop.eup %1179  ;;  %v1109_v24 = vld [vmem:[%s1698_s7 + $0x40] sm:$0xff] }
 0x9c1   :  { %1098 = vmatmul.msk.f32.vlgmr.msrb.gmra.mxu2 %vm125_vm1, %v743_v23  ;;  %v742_v32 = vmul.f32 %v1180_v31, %v1168_v6  ;;  %v1112_v6 = vld [vmem:[%s1698_s7 + $0x58] sm:$0xff]  ;;  %v1110_v23 = vld [vmem:[%s1698_s7 + $0x48] sm:$0xff] }
 0x9c7   :  { %v745_v27 = vpop.permute.xlu2 %744 }
 0x9c8   :  { %765 = vmatpush.msrb.mxu3 %v745_v27 }
 0x9c9   :  { %v771_v30 = vpop.permute.xlu0 %770 }
 0x9ca   :  { %791 = vmatpush.msrb.mxu0 %v771_v30  ;;  %884 = vmatpush.msra.mxu3 %v1102_v42  ;;  %v962_v30 = vperm.slane %v1615_v52, 3  ;;  %v1017_v42 = vld [vmem:[%s1700_s9 + $0x18] sm:$0xff] }
 0x9cb   :  { %1096 = vmatmul.msk.f32.vlgmr.msrb.gmra.mxu0 %vm125_vm1, %v741_v29  ;;  %1037 = vmatpush.msra.mxu2 %v1017_v42 }
 0x9cc   :  { %885 = vmatpush.msra.mxu3 %v1101_v43  ;;  %944 = vmatpush.msra.mxu0 %v1107_v18  ;;  %v1016_v43 = vld [vmem:[%s1700_s9 + $0x10] sm:$0xff] }
 0x9cd   :  { %v797_v33 = vpop.permute.xlu1 %796  ;;  %1038 = vmatpush.msra.mxu2 %v1016_v43 }
 0x9ce   :  { %817 = vmatpush.msra.mxu1 %v797_v33  ;;  %886 = vmatpush.msra.mxu3 %v1100_v44  ;;  %v1015_v44 = vld [vmem:[%s1700_s9 + $0x8] sm:$0xff] }
 0x9cf   :  { %1097 = vmatmul.msk.f32.vlgmr.msra.gmra.mxu1 %vm125_vm1, %v742_v32  ;;  %945 = vmatpush.msra.mxu0 %v1106_v40 }
 0x9d0   :  { %887 = vmatpush.msra.mxu3 %v1099_v21  ;;  %974 = vmatpush.msrb.mxu1 %v1116_v17  ;;  %v1014_v21 = vld [vmem:[%s1700_s9] sm:$0xff] }
 0x9d1   :  { %1039 = vmatpush.msra.mxu2 %v1015_v44 }
 0x9d2   :  { %975 = vmatpush.msrb.mxu1 %v1115_v0 }
 0x9d3   :  { %1040 = vmatpush.msra.mxu2 %v1014_v21 }
 0x9d4   :  { %976 = vmatpush.msrb.mxu1 %v1114_v1 }
 0x9d6   :  { %977 = vmatpush.msrb.mxu1 %v1113_v3 }
 0x9d8   :  { %978 = vmatpush.msrb.mxu1 %v1112_v6 }
 0x9da   :  { %979 = vmatpush.msrb.mxu1 %v1111_v22 }
 0x9dc   :  { %980 = vmatpush.msrb.mxu1 %v1110_v23 }
 0x9de   :  { %981 = vmatpush.msrb.mxu1 %v1109_v24 }
 0x9f4   :  { %v726_v35 = vpop.xlane.xlu0 %725 }
 0x9f5   :  { %1181 = vrcp.f32 %v726_v35 }
 0x9fb   :  { %v1182_v36 = vpop.eup %1181 }
 0x9fc   :  { %v740_v37 = vmul.f32 %v1182_v36, %v1174_v14 }
 0x9fe   :  { %1095 = vmatmul.msk.f32.vlgmr.msrb.gmra.mxu3 %vm125_vm1, %v740_v37 }
 0xa44   :  { %v845_v39 = vpop.f32.mrf.mxu2 }
 0xa48   :  { %v793_v38 = vpop.f32.mrf.mxu0 }
 0xa49   :  { %849 = vrot.lane.b32.xlu1 %v793_v38, %s1291_s26 }
 0xa4c   :  { %v819_v4 = vpop.f32.mrf.mxu1 }
 0xa4d   :  { %853 = vrot.lane.b32.xlu2 %v819_v4, %s1705_s3 }
 0xa51   :  { %857 = vrot.lane.b32.xlu1 %v845_v39, %s1706_s24 }
 0xa81   :  { %v767_v46 = vpop.f32.mrf.mxu3 }
 0xaa7   :  { %v854_v48 = vpop.permute.xlu2 %853 }
 0xabb   :  { %v850_v45 = vpop.permute.xlu1 %849 }
 0xabc   :  { %v860_v47 = vsel %vm125_vm1, %v767_v46, %v850_v45 }
 0xabd   :  { %v861_v49 = vsel %vm395_vm2, %v860_v47, %v854_v48 }
 0xac3   :  { %v858_v50 = vpop.permute.xlu1 %857 }
 0xac4   :  { %v862_v51 = vsel %vm397_vm3, %v861_v49, %v858_v50 }
 0xac5   :  { %1103 = vmatmul.msk.f32.vlgmr.msra.gmra.mxu3 %vm98_vm0, %v862_v51 }
 0xb48   :  { %v889_v54 = vpop.f32.mrf.mxu3 }
 0xb49   :  { %v890_v55 = vadd.f32 %v889_v54, %v868_v53 }
 0xb4b   :  { %v892_v56 = vadd.f32 %v890_v55, %v553_v41  ;;  %v1105_v41 = vld [vmem:[%s1696_s5 + $0x28] sm:$0xff]  ;;  %v1009_v55 = vperm.slane %v1615_v52, 4 }
 0xb4c   :  { %946 = vmatpush.msra.mxu0 %v1105_v41 }
 0xb4d   :  { %v893_v57 = vsel %vm98_vm0, %v892_v56, 0.0 }
 0xb4e   :  { %894 = vadd.xlane.f32.xlu2 %v893_v57  ;;  %947 = vmatpush.msra.mxu0 %v1104_v63 }
 0xbc1   :  { %v895_v58 = vpop.xlane.xlu2 %894 }
 0xbc2   :  { %v896_v59 = vmul.f32 %v895_v58, %v1485_v34  ;;  %v1011_v58 = vperm.slane %v1615_v52, 5 }
 0xbc4   :  { %v897_v60 = vsub.f32 %v892_v56, %v896_v59 }
 0xbc6   :  { %v898_v61 = vmul.f32 %v897_v60, %v897_v60 }
 0xbc8   :  { %v899_v62 = vsel %vm98_vm0, %v898_v61, 0.0  ;;  %v1144_v61 = vld [vmem:[%s1701_s10] ss:$0 sm:$0xff] }
 0xbc9   :  { %900 = vadd.xlane.f32.xlu1 %v899_v62 }
 0xc3c   :  { %v901_v16 = vpop.xlane.xlu1 %900 }
 0xc3d   :  { %v902_v2 = vmul.f32 %v901_v16, %v1485_v34 }
 0xc3f   :  { %v903_v5 = vadd.f32 1e-05, %v902_v2 }
 0xc41   :  { %1183 = vrsqrt.f32 %v903_v5  ;;  %vm910_vm13 = vweird.f32 %v903_v5 }
 0xc47   :  { %v1184_v7 = vpop.eup %1183 }
 0xc48   :  { %v905_v8 = vmul.f32 %v1184_v7, %v903_v5  ;;  %vm911_vm12 = vweird.f32 %v1184_v7 }
 0xc49   :  { %vm912_vm14 = vmor %vm910_vm13, %vm911_vm12 }
 0xc4a   :  { %v906_v28 = vmul.f32 %v1184_v7, %v905_v8 }
 0xc4c   :  { %v907_v9 = vmul.f32 0.5, %v906_v28 }
 0xc4e   :  { %v908_v10 = vsub.f32 1.5, %v907_v9 }
 0xc50   :  { %v909_v11 = vmul.f32 %v1184_v7, %v908_v10 }
 0xc52   :  { %v913_v13 = vsel %vm912_vm14, %v1184_v7, %v909_v11 }
 0xc53   :  { %v914_v14 = vmul.f32 %v913_v13, %v897_v60 }
 0xc55   :  { %v916_v19 = vmul.f32 %v915_v12, %v914_v14 }
 0xc57   :  { %v918_v20 = vadd.f32 %v917_v15, %v916_v19 }
 0xc59   :  { %1108 = vmatmul.msk.f32.vlgmr.msra.gmra.mxu0 %vm98_vm0, %v918_v20 }
 0xcd6   :  { %v949_v26 = vpop.f32.mrf.mxu0 }
 0xcd7   :  { %v950_v27 = vadd.f32 %v1143_v25, %v949_v26 }
 0xcd9   :  { %v952_v29 = vmax.f32 %v950_v27, 0.0 }
 0xcdb   :  { %1117 = vmatmul.msk.f32.vlgmr.msrb.gmra.mxu1 %vm502_vm8, %v952_v29 }
 0xd58   :  { %v983_v31 = vpop.f32.mrf.mxu1 }
 0xd59   :  { %v984_v32 = vadd.f32 %v983_v31, %v962_v30 }
 0xd5b   :  { %v986_v33 = vadd.f32 %v984_v32, %v918_v20 }
 0xd5d   :  { %v987_v35 = vsel %vm98_vm0, %v986_v33, 0.0 }
 0xd5e   :  { %988 = vadd.xlane.f32.xlu0 %v987_v35 }
 0xdd1   :  { %v989_v36 = vpop.xlane.xlu0 %988 }
 0xdd2   :  { %v990_v37 = vmul.f32 %v989_v36, %v1485_v34 }
 0xdd4   :  { %v991_v38 = vsub.f32 %v986_v33, %v990_v37 }
 0xdd6   :  { %v992_v4 = vmul.f32 %v991_v38, %v991_v38 }
 0xdd8   :  { %v993_v39 = vsel %vm98_vm0, %v992_v4, 0.0 }
 0xdd9   :  { %994 = vadd.xlane.f32.xlu0 %v993_v39 }
 0xe4c   :  { %v995_v45 = vpop.xlane.xlu0 %994 }
 0xe4d   :  { %v996_v46 = vmul.f32 %v995_v45, %v1485_v34 }
 0xe4f   :  { %v997_v47 = vadd.f32 1e-05, %v996_v46 }
 0xe51   :  { %1185 = vrsqrt.f32 %v997_v47  ;;  %vm1004_vm1 = vweird.f32 %v997_v47 }
 0xe57   :  { %v1186_v48 = vpop.eup %1185 }
 0xe58   :  { %v999_v49 = vmul.f32 %v1186_v48, %v997_v47  ;;  %vm1005_vm15 = vweird.f32 %v1186_v48 }
 0xe59   :  { %vm1006_vm3 = vmor %vm1004_vm1, %vm1005_vm15 }
 0xe5a   :  { %v1000_v50 = vmul.f32 %v1186_v48, %v999_v49 }
 0xe5c   :  { %v1001_v51 = vmul.f32 0.5, %v1000_v50 }
 0xe5e   :  { %v1002_v53 = vsub.f32 1.5, %v1001_v51 }
 0xe60   :  { %v1003_v54 = vmul.f32 %v1186_v48, %v1002_v53 }
 0xe62   :  { %v1007_v56 = vsel %vm1006_vm3, %v1186_v48, %v1003_v54 }
 0xe63   :  { %v1008_v57 = vmul.f32 %v1007_v56, %v991_v38 }
 0xe65   :  { %v1010_v59 = vmul.f32 %v1009_v55, %v1008_v57 }
 0xe67   :  { %v1012_v60 = vadd.f32 %v1011_v58, %v1010_v59 }
 0xe69   :  { %v1013_v34 = vmax.f32 %v1012_v60, 0.0 }
 0xe6b   :  { %1118 = vmatmul.msk.f32.vlgmr.msra.gmra.mxu2 %vm98_vm0, %v1013_v34 }
 0xeee   :  { %v1042_v62 = vpop.f32.mrf.mxu2 }
 0xeef   :  { %v1043_v18 = vadd.f32 %v1144_v61, %v1042_v62 }
 0xef1   :  { %1045 = vst.msk [vmem:[#allocation8] sm:$0xff] %vm395_vm2, %v1043_v18 }
 0xef2   :  { %1056 = dma.vmem_to_hbm [thread:$0]  %s1052_s14, 128, %s1054_s17, [#allocation4]  }
 0xef3   :  { %1287 = dma.done.wait [#allocation4], 128  }
 0xef4   :  { %1288 = vsyncadd [#allocation4], 4294967168 }
 0xef5   :  { %1061 = vsyncpa [#allocation3], 1 }
 0xef6   :  { %1062 = vsyncpa [#allocation6], 1 }
 0xef7   :  { %1063 = vsyncpa [#allocation4], 1 }

</bundles_post_ra>
